<compile_context>
chip_gen: v7x
topology: tpu7x:2x2x1
jax: 0.10.0
libtpu: 0.0.40
codegen_flags: <defaults>
</compile_context>

<pallas_src>
import functools

import jax
import jax.numpy as jnp
from jax.experimental import pallas as pl
from jax.experimental.pallas import tpu as pltpu


def _round_up(v, m):
    return ((v + m - 1) // m) * m


# ----------------------------------------------------------------------------
# Fused Pallas kernel, grid = (num_layers, num_edge_tiles)
# ----------------------------------------------------------------------------
def fused_gin_kernel(
    src_ref, dst_ref, batch_ref,           # int32 glue indices (src tiled / dst tiled / batch)
    x_ref, epos_ref, wz_ref,               # node feats, edge_pos tile (bf16), z_initial (bf16)
    zw_ref, gvec_ref,                      # z-MLP Linear weight, packed global vectors [8,H]
    wslab_ref, vslab_ref,                  # per-layer weights [1,4H,H], vectors [1,8,H]
    l2w_ref, l2b_ref,                      # lin2 (lane-padded to 128)
    out_ref,                               # [G_pad, 128] log-probs (lane-dense)
    h_scr, agg_scr, z_scr, pooled_scr,     # persistent VMEM scratch
    *, num_classes):
    f32 = jnp.float32
    bf16 = jnp.bfloat16
    n_pad, hidden = h_scr.shape
    te = src_ref.shape[0]
    g_pad = pooled_scr.shape[0]

    l = pl.program_id(0)
    t = pl.program_id(1)
    nt = pl.num_programs(1)
    last_l = pl.num_programs(0) - 1

    # ---- one-time / per-layer initialization (scratch persists across grid) --
    @pl.when(jnp.logical_and(l == 0, t == 0))
    def _init():
        h_scr[...] = x_ref[...]
        pooled_scr[...] = jnp.zeros_like(pooled_scr)

    @pl.when(t == 0)
    def _init_layer():
        agg_scr[...] = jnp.zeros_like(agg_scr)

    # ---- glue masks built on-chip per edge tile, directly in bf16 ------------
    col_n = jax.lax.broadcasted_iota(jnp.int32, (te, n_pad), 1)
    gather = (src_ref[...] == col_n).astype(bf16)          # [TE, N] one-hot(src)
    row_n = jax.lax.broadcasted_iota(jnp.int32, (n_pad, te), 0)
    scatter = (dst_ref[...] == row_n).astype(bf16)         # [N, TE] one-hot(dst)

    gvec = gvec_ref[...]                                   # [8, H] packed global rows
    off = pl.multiple_of(t * te, te)

    # ---- z_embedding for this edge tile (layer 0 only), cached in VMEM -------
    @pl.when(l == 0)
    def _zemb():
        z = jnp.dot(epos_ref[...], wz_ref[...], preferred_element_type=f32)   # [TE,H]
        z = jnp.maximum(z * gvec[0:1] + gvec[1:2], 0.0)        # BN + ReLU (dropout=id)
        z = jnp.dot(z, zw_ref[...], preferred_element_type=f32) + gvec[2:3]   # Linear
        z = jnp.maximum(z * gvec[3:4] + gvec[4:5], 0.0)        # BN + ReLU
        z_scr[pl.ds(off, te), :] = z

    # ---- GINEConv message + scatter-add for this edge tile -------------------
    wsl = wslab_ref[0]                                      # [4H, H]: Wp|W1|W2|lin1_l
    vsl = vslab_ref[0]                                      # [8, H]: bp|b1|s1|t1|b2|s2|t2|1+eps
    z_tile = z_scr[pl.ds(off, te), :]                       # [TE, H]
    eproj = jnp.dot(z_tile, wsl[0:hidden], preferred_element_type=f32) + vsl[0:1]
    x_src = jnp.dot(gather, h_scr[...].astype(bf16), preferred_element_type=f32)
    msg = jnp.maximum(x_src + eproj, 0.0).astype(bf16)      # ReLU(x_j + e_ij)
    agg_scr[...] += jnp.dot(scatter, msg, preferred_element_type=f32)

    # ---- layer epilogue: node MLP, mean-pool, fold lin1 block ----------------
    @pl.when(t == nt - 1)
    def _finish_layer():
        hh = agg_scr[...] + vsl[7:8] * h_scr[...]           # agg + (1+eps)*h
        hh = jnp.dot(hh, wsl[hidden:2 * hidden], preferred_element_type=f32) + vsl[1:2]
        hh = jnp.maximum(hh * vsl[2:3] + vsl[3:4], 0.0)
        hh = jnp.dot(hh, wsl[2 * hidden:3 * hidden], preferred_element_type=f32) + vsl[4:5]
        h = jnp.maximum(hh * vsl[5:6] + vsl[6:7], 0.0)
        h_scr[...] = h

        row_g = jax.lax.broadcasted_iota(jnp.int32, (g_pad, n_pad), 0)
        pool_b = (batch_ref[...] == row_g)                  # [G, N] membership
        inv_cnt = 1.0 / jnp.maximum(
            jnp.sum(pool_b.astype(f32), axis=1, keepdims=True), 1.0)
        g_l = jnp.dot(pool_b.astype(bf16), h.astype(bf16),
                      preferred_element_type=f32) * inv_cnt
        # lin1(cat(xs)) == sum_l pool(x_l) @ lin1_block_l
        pooled_scr[...] += jnp.dot(g_l, wsl[3 * hidden:4 * hidden],
                                   preferred_element_type=f32)

    # ---- readout head on the very last grid step ------------------------------
    @pl.when(jnp.logical_and(l == last_l, t == nt - 1))
    def _head():
        head = pooled_scr[...] + gvec[5:6]                  # lin1 bias
        head = head * gvec[6:7] + gvec[7:8]                 # bn_lin1 (num_graphs > 1)
        head = jnp.maximum(head, 0.0)                       # dropout=id, ReLU
        logits = jnp.dot(head, l2w_ref[...], preferred_element_type=f32) + l2b_ref[...]
        col_c = jax.lax.broadcasted_iota(jnp.int32, logits.shape, 1)
        valid = col_c < num_classes
        m = jnp.max(jnp.where(valid, logits, -jnp.inf), axis=-1, keepdims=True)
        p = jnp.where(valid, jnp.exp(logits - m), 0.0)
        lse = m + jnp.log(jnp.sum(p, axis=-1, keepdims=True))
        out_ref[...] = jnp.where(valid, logits - lse, 0.0)


# ----------------------------------------------------------------------------
# Parameter initialization (deterministic, eval-mode BN folded to scale/shift)
# ----------------------------------------------------------------------------
def init_params(key, num_features, hidden, num_layers, num_classes, z_in=1800):
    keys = iter(jax.random.split(key, 128))

    def lin(fan_in, fan_out):
        w = 0.1 * jax.random.normal(next(keys), (fan_in, fan_out), jnp.float32)
        b = 0.05 * jax.random.normal(next(keys), (1, fan_out), jnp.float32)
        return w, b

    def bn(dim):
        gamma = jax.random.uniform(next(keys), (dim,), jnp.float32, 0.8, 1.2)
        beta = 0.1 * jax.random.normal(next(keys), (dim,), jnp.float32)
        mean = 0.1 * jax.random.normal(next(keys), (dim,), jnp.float32)
        var = jax.random.uniform(next(keys), (dim,), jnp.float32, 0.5, 1.5)
        scale = gamma / jnp.sqrt(var + 1e-5)
        shift = beta - mean * scale
        return scale[None, :], shift[None, :]

    p = {}
    p['Wz'] = 0.05 * jax.random.normal(next(keys), (z_in, hidden), jnp.float32)
    p['zbn_a_s'], p['zbn_a_h'] = bn(hidden)
    p['zW'], p['zb'] = lin(hidden, hidden)
    p['zbn_b_s'], p['zbn_b_h'] = bn(hidden)

    convs = []
    fin = num_features
    for _ in range(num_layers):
        layer = {'eps': 0.0}                      # train_eps=True -> eps init 0.0
        layer['Wp'], layer['bp'] = lin(hidden, fin)   # GINEConv edge Linear(edge_dim, in_ch)
        layer['W1'], layer['b1'] = lin(fin, hidden)
        layer['bn1_s'], layer['bn1_h'] = bn(hidden)
        layer['W2'], layer['b2'] = lin(hidden, hidden)
        layer['bn2_s'], layer['bn2_h'] = bn(hidden)
        convs.append(layer)
        fin = hidden
    p['convs'] = convs

    p['lin1_W'], p['lin1_b'] = lin(num_layers * hidden, hidden)
    p['bn_lin1_s'], p['bn_lin1_h'] = bn(hidden)
    p['lin2_W'], p['lin2_b'] = lin(hidden, num_classes)
    return p


# ----------------------------------------------------------------------------
# Forward pass (single fused Pallas call) — wrap in jax.jit at the call site
# ----------------------------------------------------------------------------
def nested_gin_forward(params, x, edge_index, batch, edge_pos, num_graphs,
                       *, edge_tile=512):
    n, f = x.shape
    e = edge_index.shape[1]
    hidden = params['Wz'].shape[1]
    num_layers = len(params['convs'])
    num_classes = params['lin2_W'].shape[1]
    assert f <= hidden, "layer-0 features are zero-padded up to `hidden`"

    # ---- padded / tiled geometry -------------------------------------------
    n_pad = _round_up(n, 8)
    if e > edge_tile:
        te = edge_tile                                 # multiple of 128
        e_pad = _round_up(e, te)
    else:
        te = _round_up(e, 8)
        e_pad = te
    nt = e_pad // te
    g_pad = _round_up(max(num_graphs, 8), 8)
    c_pad = 128                                        # lane-dense head / output
    z_in = edge_pos.shape[1]
    z_pad = _round_up(z_in, 128)                       # 1800 -> 1920

    # ---- host-side packing (zero-padded, semantics unchanged) ---------------
    epos = jnp.pad(edge_pos, ((0, e_pad - e), (0, z_pad - z_in))).astype(jnp.bfloat16)
    wz = jnp.pad(params['Wz'], ((0, z_pad - z_in), (0, 0))).astype(jnp.bfloat16)
    x_pad = jnp.pad(x, ((0, n_pad - n), (0, hidden - f)))

    src_col = jnp.pad(edge_index[0].astype(jnp.int32), (0, e_pad - e),
                      constant_values=-1)[:, None]          # [E_pad, 1]
    dst_row = jnp.pad(edge_index[1].astype(jnp.int32), (0, e_pad - e),
                      constant_values=-1)[None, :]          # [1, E_pad]
    batch_row = jnp.pad(batch.astype(jnp.int32), (0, n_pad - n),
                        constant_values=-1)[None, :]        # [1, N_pad]

    def pad_rows(w): return jnp.pad(w, ((0, hidden - w.shape[0]), (0, 0)))
    def pad_cols(w): return jnp.pad(w, ((0, 0), (0, hidden - w.shape[1])))

    convs = params['convs']
    lin1w = params['lin1_W'].reshape(num_layers, hidden, hidden)
    # per-layer weight slab [L, 4H, H]: Wp | W1 | W2 | lin1 block
    wslab = jnp.stack([
        jnp.concatenate([pad_cols(c['Wp']), pad_rows(c['W1']), c['W2'], lin1w[i]],
                        axis=0)
        for i, c in enumerate(convs)])
    # per-layer vector slab [L, 8, H]: bp | b1 | s1 | t1 | b2 | s2 | t2 | (1+eps)
    vslab = jnp.stack([
        jnp.concatenate([pad_cols(c['bp']), c['b1'], c['bn1_s'], c['bn1_h'],
                         c['b2'], c['bn2_s'], c['bn2_h'],
                         jnp.full((1, hidden), 1.0, jnp.float32) + c['eps']],
                        axis=0)
        for c in convs])
    # global vector slab [8, H]: zbn_a(s,h) | zb | zbn_b(s,h) | lin1_b | bn_lin1(s,h)
    gvec = jnp.concatenate([params['zbn_a_s'], params['zbn_a_h'], params['zb'],
                            params['zbn_b_s'], params['zbn_b_h'],
                            params['lin1_b'], params['bn_lin1_s'],
                            params['bn_lin1_h']], axis=0)
    l2w = jnp.pad(params['lin2_W'], ((0, 0), (0, c_pad - num_classes)))
    l2b = jnp.pad(params['lin2_b'], ((0, 0), (0, c_pad - num_classes)))

    args = (src_col, dst_row, batch_row, x_pad, epos, wz,
            params['zW'], gvec, wslab, vslab, l2w, l2b)

    in_specs = [
        pl.BlockSpec((te, 1), lambda l, t: (t, 0)),                   # src (tiled)
        pl.BlockSpec((1, te), lambda l, t: (0, t)),                   # dst (tiled)
        pl.BlockSpec((1, n_pad), lambda l, t: (0, 0)),                # batch
        pl.BlockSpec((n_pad, hidden), lambda l, t: (0, 0)),           # x
        pl.BlockSpec((te, z_pad),
                     lambda l, t: (jnp.where(l == 0, t, 0), 0)),      # edge_pos (layer-0 only)
        pl.BlockSpec((z_pad, hidden), lambda l, t: (0, 0)),           # Wz
        pl.BlockSpec((hidden, hidden), lambda l, t: (0, 0)),          # zW
        pl.BlockSpec((8, hidden), lambda l, t: (0, 0)),               # global vectors
        pl.BlockSpec((1, 4 * hidden, hidden), lambda l, t: (l, 0, 0)),  # per-layer weights
        pl.BlockSpec((1, 8, hidden), lambda l, t: (l, 0, 0)),         # per-layer vectors
        pl.BlockSpec((hidden, c_pad), lambda l, t: (0, 0)),           # lin2 W
        pl.BlockSpec((1, c_pad), lambda l, t: (0, 0)),                # lin2 b
    ]
    out_shape = jax.ShapeDtypeStruct((g_pad, c_pad), jnp.float32)
    out_spec = pl.BlockSpec((g_pad, c_pad), lambda l, t: (0, 0))

    scratch = [
        pltpu.VMEM((n_pad, hidden), jnp.float32),    # h (node state)
        pltpu.VMEM((n_pad, hidden), jnp.float32),    # per-layer scatter accumulator
        pltpu.VMEM((e_pad, hidden), jnp.float32),    # cached z_embedding
        pltpu.VMEM((g_pad, hidden), jnp.float32),    # pooled lin1 accumulation
    ]

    # ---- generation-aware VMEM budget ---------------------------------------
    def nbytes(a): return int(a.size) * a.dtype.itemsize
    tile_bytes = te * z_pad * 2 + te * 4 + te * 4            # per-tile DMA buffers
    resident = sum(nbytes(a) for a in (x_pad, wz, params['zW'], gvec, l2w, l2b)) \
        + 2 * (nbytes(wslab) + nbytes(vslab)) // num_layers + n_pad * 4
    scratch_bytes = (2 * n_pad + e_pad + g_pad) * hidden * 4
    mask_bytes = 2 * te * n_pad * 2 + 6 * te * hidden * 4
    need = 2 * tile_bytes + resident + scratch_bytes + mask_bytes + (2 << 20)
    try:
        info = pltpu.get_tpu_info()
        vmem_cap = int(getattr(info, "vmem_capacity_bytes", 64 << 20))
    except Exception:
        vmem_cap = 64 << 20                                   # v7x per-core floor
    vmem_limit = min(max(2 * need, 32 << 20), (vmem_cap * 3) // 4)
    vmem_limit = int(max(vmem_limit, need))

    flops = int(
        2 * e_pad * z_pad * hidden + 2 * e_pad * hidden * hidden          # z_embedding
        + num_layers * (2 * e_pad * hidden * hidden                       # edge proj
                        + 2 * e_pad * n_pad * hidden                      # gather
                        + 2 * n_pad * e_pad * hidden                      # scatter-add
                        + 4 * n_pad * hidden * hidden                     # conv MLP
                        + 2 * g_pad * n_pad * hidden                      # mean pool
                        + 2 * g_pad * hidden * hidden)                    # lin1 block
        + 2 * g_pad * hidden * c_pad)
    bytes_accessed = int(sum(nbytes(a) for a in args) + g_pad * c_pad * 4)
    transcendentals = int(g_pad * (c_pad + 1))

    kern = functools.partial(fused_gin_kernel, num_classes=num_classes)
    out = pl.pallas_call(
        kern,
        out_shape=out_shape,
        grid=(num_layers, nt),
        in_specs=in_specs,
        out_specs=out_spec,
        scratch_shapes=scratch,
        compiler_params=pltpu.CompilerParams(
            dimension_semantics=("arbitrary", "arbitrary"),
            vmem_limit_bytes=vmem_limit),
        cost_estimate=pl.CostEstimate(flops=flops,
                                      transcendentals=transcendentals,
                                      bytes_accessed=bytes_accessed),
    )(*args)
    return out[:num_graphs, :num_classes]


# ----------------------------------------------------------------------------
# Pure-JAX reference (f32, highest precision)
# ----------------------------------------------------------------------------
def reference_forward(params, x, edge_index, batch, edge_pos, num_graphs):
    hp = jax.lax.Precision.HIGHEST
    dot = lambda a, b: jnp.dot(a, b, precision=hp)
    relu = jax.nn.relu
    src, dst = edge_index[0], edge_index[1]

    z = dot(edge_pos, params['Wz'])
    z = relu(z * params['zbn_a_s'] + params['zbn_a_h'])
    z = dot(z, params['zW']) + params['zb']
    z_emb = relu(z * params['zbn_b_s'] + params['zbn_b_h'])

    xs = []
    h = x
    for layer in params['convs']:
        eproj = dot(z_emb, layer['Wp']) + layer['bp']
        msg = relu(h[src] + eproj)
        agg = jnp.zeros_like(h).at[dst].add(msg)
        hh = agg + (1.0 + layer['eps']) * h
        hh = dot(hh, layer['W1']) + layer['b1']
        hh = relu(hh * layer['bn1_s'] + layer['bn1_h'])
        hh = dot(hh, layer['W2']) + layer['b2']
        h = relu(hh * layer['bn2_s'] + layer['bn2_h'])
        xs.append(h)
    xcat = jnp.concatenate(xs, axis=1)

    onehot_g = (batch[None, :] == jnp.arange(num_graphs)[:, None])
    counts = jnp.maximum(jnp.sum(onehot_g, axis=1, keepdims=True), 1)
    pool = onehot_g.astype(jnp.float32) / counts.astype(jnp.float32)
    g = dot(pool, xcat)
    hh = dot(g, params['lin1_W']) + params['lin1_b']
    hh = hh * params['bn_lin1_s'] + params['bn_lin1_h']     # num_graphs > 1
    hh = relu(hh)
    logits = dot(hh, params['lin2_W']) + params['lin2_b']
    return jax.nn.log_softmax(logits, axis=-1)


# ----------------------------------------------------------------------------
if __name__ == "__main__":
    num_features, hidden, num_layers, num_classes, z_in = 8, 32, 3, 4, 1800
    N, E, G = 24, 48, 2

    key = jax.random.PRNGKey(0)
    k_data, k_params = jax.random.split(key)
    kd = jax.random.split(k_data, 4)

    x = jax.random.normal(kd[0], (N, num_features), jnp.float32)
    src = jax.random.randint(kd[1], (E,), 0, N, dtype=jnp.int32)
    dst = jax.random.randint(kd[2], (E,), 0, N, dtype=jnp.int32)
    edge_index = jnp.stack([src, dst])                                  # [2, E]
    batch = jnp.concatenate([jnp.zeros(N // 2, jnp.int32),
                             jnp.ones(N - N // 2, jnp.int32)])          # [N]
    edge_pos = jax.random.uniform(kd[3], (E, z_in), jnp.float32)        # [E, 1800]

    params = init_params(k_params, num_features, hidden, num_layers,
                         num_classes, z_in)

    fwd = jax.jit(nested_gin_forward, static_argnums=(5,))   # host packing + kernel under jit
    out = jax.block_until_ready(fwd(params, x, edge_index, batch, edge_pos, G))

    ref = jax.block_until_ready(
        reference_forward(params, x, edge_index, batch, edge_pos, G))

    assert out.shape == (G, num_classes)
    assert bool(jnp.all(jnp.isfinite(out)))
    # bf16 MXU operands (edge_pos/Wz + gather/scatter/pool path), f32 accumulation.
    assert jnp.allclose(out, ref, atol=3e-2, rtol=3e-2), (out, ref)

    print("KERNEL_OK")
</pallas_src>

<mosaic_0001>
module attributes {stable_mosaic.version = 11 : i64} {
  func.func @fused_gin_kernel(%arg0: i32, %arg1: i32, %arg2: memref<48x1xi32, #tpu.memory_space<vmem>>, %arg3: memref<1x48xi32, #tpu.memory_space<vmem>>, %arg4: memref<1x24xi32, #tpu.memory_space<vmem>>, %arg5: memref<24x32xf32, #tpu.memory_space<vmem>>, %arg6: memref<48x1920xbf16, #tpu.memory_space<vmem>>, %arg7: memref<1920x32xbf16, #tpu.memory_space<vmem>>, %arg8: memref<32x32xf32, #tpu.memory_space<vmem>>, %arg9: memref<8x32xf32, #tpu.memory_space<vmem>>, %arg10: memref<1x128x32xf32, #tpu.memory_space<vmem>>, %arg11: memref<1x8x32xf32, #tpu.memory_space<vmem>>, %arg12: memref<32x128xf32, #tpu.memory_space<vmem>>, %arg13: memref<1x128xf32, #tpu.memory_space<vmem>>, %arg14: memref<8x128xf32, #tpu.memory_space<vmem>>, %arg15: memref<24x32xf32, #tpu.memory_space<vmem>>, %arg16: memref<24x32xf32, #tpu.memory_space<vmem>>, %arg17: memref<48x32xf32, #tpu.memory_space<vmem>>, %arg18: memref<8x32xf32, #tpu.memory_space<vmem>>) attributes {dimension_semantics = [#tpu.dimension_semantics<arbitrary>, #tpu.dimension_semantics<arbitrary>], iteration_bounds = array<i64: 3, 1>, scalar_prefetch = 0 : i64, scratch_operands = 4 : i64, tpu.core_type = #tpu.core_type<tc>, window_params = [{transform_indices = @transform_0, window_bounds = array<i64: 48, 1>}, {transform_indices = @transform_1, window_bounds = array<i64: 1, 48>}, {pipeline_mode = #tpu.pipeline_mode<synchronous>, transform_indices = @transform_2, window_bounds = array<i64: 1, 24>}, {pipeline_mode = #tpu.pipeline_mode<synchronous>, transform_indices = @transform_3, window_bounds = array<i64: 24, 32>}, {transform_indices = @transform_4, window_bounds = array<i64: 48, 1920>}, {pipeline_mode = #tpu.pipeline_mode<synchronous>, transform_indices = @transform_5, window_bounds = array<i64: 1920, 32>}, {pipeline_mode = #tpu.pipeline_mode<synchronous>, transform_indices = @transform_6, window_bounds = array<i64: 32, 32>}, {pipeline_mode = #tpu.pipeline_mode<synchronous>, transform_indices = @transform_7, window_bounds = array<i64: 8, 32>}, {transform_indices = @transform_8, window_bounds = array<i64: 1, 128, 32>}, {transform_indices = @transform_9, window_bounds = array<i64: 1, 8, 32>}, {pipeline_mode = #tpu.pipeline_mode<synchronous>, transform_indices = @transform_10, window_bounds = array<i64: 32, 128>}, {pipeline_mode = #tpu.pipeline_mode<synchronous>, transform_indices = @transform_11, window_bounds = array<i64: 1, 128>}, {pipeline_mode = #tpu.pipeline_mode<synchronous>, transform_indices = @transform_12, window_bounds = array<i64: 8, 128>}]} {
    %c0_i32 = arith.constant 0 : i32
    %0 = arith.cmpi eq, %arg0, %c0_i32 : i32
    %c0_i32_0 = arith.constant 0 : i32
    %1 = arith.cmpi eq, %arg1, %c0_i32_0 : i32
    %2 = arith.andi %0, %1 : i1
    %3 = arith.extui %2 : i1 to i32
    %c0_i32_1 = arith.constant 0 : i32
    %4 = arith.cmpi ne, %3, %c0_i32_1 : i32
    scf.if %4 {
      %c0_31 = arith.constant 0 : index
      %c0_32 = arith.constant 0 : index
      %58 = vector.load %arg5[%c0_31, %c0_32] : memref<24x32xf32, #tpu.memory_space<vmem>>, vector<24x32xf32>
      %c0_33 = arith.constant 0 : index
      %c0_34 = arith.constant 0 : index
      %59 = vector.load %arg15[%c0_33, %c0_34] : memref<24x32xf32, #tpu.memory_space<vmem>>, vector<24x32xf32>
      tpu.vector_store %arg15[%c0_33, %c0_34], %58 {strides = array<i32>} : memref<24x32xf32, #tpu.memory_space<vmem>>, vector<24x32xf32>,
      %cst_35 = arith.constant 0.000000e+00 : f32
      %60 = vector.broadcast %cst_35 : f32 to vector<8x32xf32>
      %c0_36 = arith.constant 0 : index
      %c0_37 = arith.constant 0 : index
      %61 = vector.load %arg18[%c0_36, %c0_37] : memref<8x32xf32, #tpu.memory_space<vmem>>, vector<8x32xf32>
      tpu.vector_store %arg18[%c0_36, %c0_37], %60 {strides = array<i32>} : memref<8x32xf32, #tpu.memory_space<vmem>>, vector<8x32xf32>,
    } else {
    }
    %c0_i32_2 = arith.constant 0 : i32
    %5 = arith.cmpi eq, %arg1, %c0_i32_2 : i32
    %6 = arith.extui %5 : i1 to i32
    %c0_i32_3 = arith.constant 0 : i32
    %7 = arith.cmpi ne, %6, %c0_i32_3 : i32
    scf.if %7 {
      %cst_31 = arith.constant 0.000000e+00 : f32
      %58 = vector.broadcast %cst_31 : f32 to vector<24x32xf32>
      %c0_32 = arith.constant 0 : index
      %c0_33 = arith.constant 0 : index
      %59 = vector.load %arg16[%c0_32, %c0_33] : memref<24x32xf32, #tpu.memory_space<vmem>>, vector<24x32xf32>
      tpu.vector_store %arg16[%c0_32, %c0_33], %58 {strides = array<i32>} : memref<24x32xf32, #tpu.memory_space<vmem>>, vector<24x32xf32>,
    } else {
    }
    %8 = tpu.iota {dimensions = array<i32: 1>} : vector<48x24xi32>
    %c0 = arith.constant 0 : index
    %c0_4 = arith.constant 0 : index
    %9 = vector.load %arg2[%c0, %c0_4] : memref<48x1xi32, #tpu.memory_space<vmem>>, vector<48x1xi32>
    %10 = vector.broadcast %9 : vector<48x1xi32> to vector<48x24xi32>
    %11 = arith.cmpi eq, %10, %8 : vector<48x24xi32>
    %12 = arith.extui %11 : vector<48x24xi1> to vector<48x24xi32>
    %13 = arith.sitofp %12 : vector<48x24xi32> to vector<48x24xf32>
    %14 = arith.truncf %13 : vector<48x24xf32> to vector<48x24xbf16>
    %15 = tpu.iota {dimensions = array<i32: 0>} : vector<24x48xi32>
    %c0_5 = arith.constant 0 : index
    %c0_6 = arith.constant 0 : index
    %16 = vector.load %arg3[%c0_5, %c0_6] : memref<1x48xi32, #tpu.memory_space<vmem>>, vector<1x48xi32>
    %17 = vector.broadcast %16 : vector<1x48xi32> to vector<24x48xi32>
    %18 = arith.cmpi eq, %17, %15 : vector<24x48xi32>
    %19 = arith.extui %18 : vector<24x48xi1> to vector<24x48xi32>
    %20 = arith.sitofp %19 : vector<24x48xi32> to vector<24x48xf32>
    %21 = arith.truncf %20 : vector<24x48xf32> to vector<24x48xbf16>
    %c0_7 = arith.constant 0 : index
    %c0_8 = arith.constant 0 : index
    %22 = vector.load %arg9[%c0_7, %c0_8] : memref<8x32xf32, #tpu.memory_space<vmem>>, vector<8x32xf32>
    %c48_i32 = arith.constant 48 : i32
    %23 = arith.muli %arg1, %c48_i32 : i32
    %24 = tpu.assume_multiple %23, 48 : i32
    %c0_i32_9 = arith.constant 0 : i32
    %25 = arith.cmpi eq, %arg0, %c0_i32_9 : i32
    %26 = arith.extui %25 : i1 to i32
    %c0_i32_10 = arith.constant 0 : i32
    %27 = arith.cmpi ne, %26, %c0_i32_10 : i32
    scf.if %27 {
      %c0_31 = arith.constant 0 : index
      %c0_32 = arith.constant 0 : index
      %58 = vector.load %arg6[%c0_31, %c0_32] : memref<48x1920xbf16, #tpu.memory_space<vmem>>, vector<48x1920xbf16>
      %c0_33 = arith.constant 0 : index
      %c0_34 = arith.constant 0 : index
      %59 = vector.load %arg7[%c0_33, %c0_34] : memref<1920x32xbf16, #tpu.memory_space<vmem>>, vector<1920x32xbf16>
      %cst_35 = arith.constant dense<0.000000e+00> : vector<48x32xf32>
      %60 = tpu.matmul %58, %59, %cst_35 {dimension_numbers = #tpu.dot_dimension_numbers<[1], [0], [0], [1], [0, 0, 1, 1], [], []>} : vector<48x1920xbf16>, vector<1920x32xbf16>, vector<48x32xf32> -> vector<48x32xf32>
      %61 = vector.extract_strided_slice %22 {offsets = [0, 0], sizes = [1, 32], strides = [1, 1]} : vector<8x32xf32> to vector<1x32xf32>
      %62 = vector.broadcast %61 : vector<1x32xf32> to vector<48x32xf32>
      %63 = arith.mulf %60, %62 : vector<48x32xf32>
      %64 = vector.extract_strided_slice %22 {offsets = [1, 0], sizes = [1, 32], strides = [1, 1]} : vector<8x32xf32> to vector<1x32xf32>
      %65 = vector.broadcast %64 : vector<1x32xf32> to vector<48x32xf32>
      %66 = arith.addf %63, %65 : vector<48x32xf32>
      %cst_36 = arith.constant 0.000000e+00 : f32
      %67 = vector.broadcast %cst_36 : f32 to vector<48x32xf32>
      %68 = arith.maximumf %66, %67 : vector<48x32xf32>
      %c0_37 = arith.constant 0 : index
      %c0_38 = arith.constant 0 : index
      %69 = vector.load %arg8[%c0_37, %c0_38] : memref<32x32xf32, #tpu.memory_space<vmem>>, vector<32x32xf32>
      %cst_39 = arith.constant dense<0.000000e+00> : vector<48x32xf32>
      %70 = tpu.matmul %68, %69, %cst_39 {dimension_numbers = #tpu.dot_dimension_numbers<[1], [0], [0], [1], [0, 0, 1, 1], [], []>} : vector<48x32xf32>, vector<32x32xf32>, vector<48x32xf32> -> vector<48x32xf32>
      %71 = vector.extract_strided_slice %22 {offsets = [2, 0], sizes = [1, 32], strides = [1, 1]} : vector<8x32xf32> to vector<1x32xf32>
      %72 = vector.broadcast %71 : vector<1x32xf32> to vector<48x32xf32>
      %73 = arith.addf %70, %72 : vector<48x32xf32>
      %74 = vector.extract_strided_slice %22 {offsets = [3, 0], sizes = [1, 32], strides = [1, 1]} : vector<8x32xf32> to vector<1x32xf32>
      %75 = vector.broadcast %74 : vector<1x32xf32> to vector<48x32xf32>
      %76 = arith.mulf %73, %75 : vector<48x32xf32>
      %77 = vector.extract_strided_slice %22 {offsets = [4, 0], sizes = [1, 32], strides = [1, 1]} : vector<8x32xf32> to vector<1x32xf32>
      %78 = vector.broadcast %77 : vector<1x32xf32> to vector<48x32xf32>
      %79 = arith.addf %76, %78 : vector<48x32xf32>
      %cst_40 = arith.constant 0.000000e+00 : f32
      %80 = vector.broadcast %cst_40 : f32 to vector<48x32xf32>
      %81 = arith.maximumf %79, %80 : vector<48x32xf32>
      %82 = arith.index_cast %24 : i32 to index
      %c0_41 = arith.constant 0 : index
      %83 = vector.load %arg17[%82, %c0_41] : memref<48x32xf32, #tpu.memory_space<vmem>>, vector<48x32xf32>
      tpu.vector_store %arg17[%82, %c0_41], %81 {strides = array<i32>} : memref<48x32xf32, #tpu.memory_space<vmem>>, vector<48x32xf32>,
    } else {
    }
    %c0_11 = arith.constant 0 : index
    %c0_12 = arith.constant 0 : index
    %c0_13 = arith.constant 0 : index
    %28 = vector.load %arg10[%c0_11, %c0_12, %c0_13] : memref<1x128x32xf32, #tpu.memory_space<vmem>>, vector<1x128x32xf32>
    %29 = vector.shape_cast %28 : vector<1x128x32xf32> to vector<128x32xf32>
    %c0_14 = arith.constant 0 : index
    %c0_15 = arith.constant 0 : index
    %c0_16 = arith.constant 0 : index
    %30 = vector.load %arg11[%c0_14, %c0_15, %c0_16] : memref<1x8x32xf32, #tpu.memory_space<vmem>>, vector<1x8x32xf32>
    %31 = vector.shape_cast %30 : vector<1x8x32xf32> to vector<8x32xf32>
    %32 = arith.index_cast %24 : i32 to index
    %c0_17 = arith.constant 0 : index
    %33 = vector.load %arg17[%32, %c0_17] : memref<48x32xf32, #tpu.memory_space<vmem>>, vector<48x32xf32>
    %34 = vector.extract_strided_slice %29 {offsets = [0, 0], sizes = [32, 32], strides = [1, 1]} : vector<128x32xf32> to vector<32x32xf32>
    %cst = arith.constant dense<0.000000e+00> : vector<48x32xf32>
    %35 = tpu.matmul %33, %34, %cst {dimension_numbers = #tpu.dot_dimension_numbers<[1], [0], [0], [1], [0, 0, 1, 1], [], []>} : vector<48x32xf32>, vector<32x32xf32>, vector<48x32xf32> -> vector<48x32xf32>
    %36 = vector.extract_strided_slice %31 {offsets = [0, 0], sizes = [1, 32], strides = [1, 1]} : vector<8x32xf32> to vector<1x32xf32>
    %37 = vector.broadcast %36 : vector<1x32xf32> to vector<48x32xf32>
    %38 = arith.addf %35, %37 : vector<48x32xf32>
    %c0_18 = arith.constant 0 : index
    %c0_19 = arith.constant 0 : index
    %39 = vector.load %arg15[%c0_18, %c0_19] : memref<24x32xf32, #tpu.memory_space<vmem>>, vector<24x32xf32>
    %40 = arith.truncf %39 : vector<24x32xf32> to vector<24x32xbf16>
    %cst_20 = arith.constant dense<0.000000e+00> : vector<48x32xf32>
    %41 = tpu.matmul %14, %40, %cst_20 {dimension_numbers = #tpu.dot_dimension_numbers<[1], [0], [0], [1], [0, 0, 1, 1], [], []>} : vector<48x24xbf16>, vector<24x32xbf16>, vector<48x32xf32> -> vector<48x32xf32>
    %42 = arith.addf %41, %38 : vector<48x32xf32>
    %cst_21 = arith.constant 0.000000e+00 : f32
    %43 = vector.broadcast %cst_21 : f32 to vector<48x32xf32>
    %44 = arith.maximumf %42, %43 : vector<48x32xf32>
    %45 = arith.truncf %44 : vector<48x32xf32> to vector<48x32xbf16>
    %c0_22 = arith.constant 0 : index
    %c0_23 = arith.constant 0 : index
    %46 = vector.load %arg16[%c0_22, %c0_23] : memref<24x32xf32, #tpu.memory_space<vmem>>, vector<24x32xf32>
    %cst_24 = arith.constant dense<0.000000e+00> : vector<24x32xf32>
    %47 = tpu.matmul %21, %45, %cst_24 {dimension_numbers = #tpu.dot_dimension_numbers<[1], [0], [0], [1], [0, 0, 1, 1], [], []>} : vector<24x48xbf16>, vector<48x32xbf16>, vector<24x32xf32> -> vector<24x32xf32>
    %48 = arith.addf %46, %47 : vector<24x32xf32>
    %c0_25 = arith.constant 0 : index
    %c0_26 = arith.constant 0 : index
    %49 = vector.load %arg16[%c0_25, %c0_26] : memref<24x32xf32, #tpu.memory_space<vmem>>, vector<24x32xf32>
    tpu.vector_store %arg16[%c0_25, %c0_26], %48 {strides = array<i32>} : memref<24x32xf32, #tpu.memory_space<vmem>>, vector<24x32xf32>,
    %c0_i32_27 = arith.constant 0 : i32
    %50 = arith.cmpi eq, %arg1, %c0_i32_27 : i32
    %51 = arith.extui %50 : i1 to i32
    %c0_i32_28 = arith.constant 0 : i32
    %52 = arith.cmpi ne, %51, %c0_i32_28 : i32
    scf.if %52 {
      %c0_31 = arith.constant 0 : index
      %c0_32 = arith.constant 0 : index
      %58 = vector.load %arg16[%c0_31, %c0_32] : memref<24x32xf32, #tpu.memory_space<vmem>>, vector<24x32xf32>
      %59 = vector.extract_strided_slice %31 {offsets = [7, 0], sizes = [1, 32], strides = [1, 1]} : vector<8x32xf32> to vector<1x32xf32>
      %c0_33 = arith.constant 0 : index
      %c0_34 = arith.constant 0 : index
      %60 = vector.load %arg15[%c0_33, %c0_34] : memref<24x32xf32, #tpu.memory_space<vmem>>, vector<24x32xf32>
      %61 = vector.broadcast %59 : vector<1x32xf32> to vector<24x32xf32>
      %62 = arith.mulf %61, %60 : vector<24x32xf32>
      %63 = arith.addf %58, %62 : vector<24x32xf32>
      %64 = vector.extract_strided_slice %29 {offsets = [32, 0], sizes = [32, 32], strides = [1, 1]} : vector<128x32xf32> to vector<32x32xf32>
      %cst_35 = arith.constant dense<0.000000e+00> : vector<24x32xf32>
      %65 = tpu.matmul %63, %64, %cst_35 {dimension_numbers = #tpu.dot_dimension_numbers<[1], [0], [0], [1], [0, 0, 1, 1], [], []>} : vector<24x32xf32>, vector<32x32xf32>, vector<24x32xf32> -> vector<24x32xf32>
      %66 = vector.extract_strided_slice %31 {offsets = [1, 0], sizes = [1, 32], strides = [1, 1]} : vector<8x32xf32> to vector<1x32xf32>
      %67 = vector.broadcast %66 : vector<1x32xf32> to vector<24x32xf32>
      %68 = arith.addf %65, %67 : vector<24x32xf32>
      %69 = vector.extract_strided_slice %31 {offsets = [2, 0], sizes = [1, 32], strides = [1, 1]} : vector<8x32xf32> to vector<1x32xf32>
      %70 = vector.broadcast %69 : vector<1x32xf32> to vector<24x32xf32>
      %71 = arith.mulf %68, %70 : vector<24x32xf32>
      %72 = vector.extract_strided_slice %31 {offsets = [3, 0], sizes = [1, 32], strides = [1, 1]} : vector<8x32xf32> to vector<1x32xf32>
      %73 = vector.broadcast %72 : vector<1x32xf32> to vector<24x32xf32>
      %74 = arith.addf %71, %73 : vector<24x32xf32>
      %cst_36 = arith.constant 0.000000e+00 : f32
      %75 = vector.broadcast %cst_36 : f32 to vector<24x32xf32>
      %76 = arith.maximumf %74, %75 : vector<24x32xf32>
      %77 = vector.extract_strided_slice %29 {offsets = [64, 0], sizes = [32, 32], strides = [1, 1]} : vector<128x32xf32> to vector<32x32xf32>
      %cst_37 = arith.constant dense<0.000000e+00> : vector<24x32xf32>
      %78 = tpu.matmul %76, %77, %cst_37 {dimension_numbers = #tpu.dot_dimension_numbers<[1], [0], [0], [1], [0, 0, 1, 1], [], []>} : vector<24x32xf32>, vector<32x32xf32>, vector<24x32xf32> -> vector<24x32xf32>
      %79 = vector.extract_strided_slice %31 {offsets = [4, 0], sizes = [1, 32], strides = [1, 1]} : vector<8x32xf32> to vector<1x32xf32>
      %80 = vector.broadcast %79 : vector<1x32xf32> to vector<24x32xf32>
      %81 = arith.addf %78, %80 : vector<24x32xf32>
      %82 = vector.extract_strided_slice %31 {offsets = [5, 0], sizes = [1, 32], strides = [1, 1]} : vector<8x32xf32> to vector<1x32xf32>
      %83 = vector.broadcast %82 : vector<1x32xf32> to vector<24x32xf32>
      %84 = arith.mulf %81, %83 : vector<24x32xf32>
      %85 = vector.extract_strided_slice %31 {offsets = [6, 0], sizes = [1, 32], strides = [1, 1]} : vector<8x32xf32> to vector<1x32xf32>
      %86 = vector.broadcast %85 : vector<1x32xf32> to vector<24x32xf32>
      %87 = arith.addf %84, %86 : vector<24x32xf32>
      %cst_38 = arith.constant 0.000000e+00 : f32
      %88 = vector.broadcast %cst_38 : f32 to vector<24x32xf32>
      %89 = arith.maximumf %87, %88 : vector<24x32xf32>
      %c0_39 = arith.constant 0 : index
      %c0_40 = arith.constant 0 : index
      %90 = vector.load %arg15[%c0_39, %c0_40] : memref<24x32xf32, #tpu.memory_space<vmem>>, vector<24x32xf32>
      tpu.vector_store %arg15[%c0_39, %c0_40], %89 {strides = array<i32>} : memref<24x32xf32, #tpu.memory_space<vmem>>, vector<24x32xf32>,
      %91 = tpu.iota {dimensions = array<i32: 0>} : vector<8x24xi32>
      %c0_41 = arith.constant 0 : index
      %c0_42 = arith.constant 0 : index
      %92 = vector.load %arg4[%c0_41, %c0_42] : memref<1x24xi32, #tpu.memory_space<vmem>>, vector<1x24xi32>
      %93 = vector.broadcast %92 : vector<1x24xi32> to vector<8x24xi32>
      %94 = arith.cmpi eq, %93, %91 : vector<8x24xi32>
      %95 = arith.extui %94 : vector<8x24xi1> to vector<8x24xi32>
      %96 = arith.sitofp %95 : vector<8x24xi32> to vector<8x24xf32>
      %cst_43 = arith.constant dense<0.000000e+00> : vector<8xf32>
      %97 = vector.multi_reduction <add>, %96, %cst_43 [1] : vector<8x24xf32> to vector<8xf32>
      %98 = vector.shape_cast %97 : vector<8xf32> to vector<8x1xf32>
      %cst_44 = arith.constant 1.000000e+00 : f32
      %99 = vector.broadcast %cst_44 : f32 to vector<8x1xf32>
      %100 = arith.maximumf %98, %99 : vector<8x1xf32>
      %cst_45 = arith.constant 1.000000e+00 : f32
      %101 = vector.broadcast %cst_45 : f32 to vector<8x1xf32>
      %102 = arith.divf %101, %100 : vector<8x1xf32>
      %103 = arith.extui %94 : vector<8x24xi1> to vector<8x24xi32>
      %104 = arith.sitofp %103 : vector<8x24xi32> to vector<8x24xf32>
      %105 = arith.truncf %104 : vector<8x24xf32> to vector<8x24xbf16>
      %106 = arith.truncf %89 : vector<24x32xf32> to vector<24x32xbf16>
      %cst_46 = arith.constant dense<0.000000e+00> : vector<8x32xf32>
      %107 = tpu.matmul %105, %106, %cst_46 {dimension_numbers = #tpu.dot_dimension_numbers<[1], [0], [0], [1], [0, 0, 1, 1], [], []>} : vector<8x24xbf16>, vector<24x32xbf16>, vector<8x32xf32> -> vector<8x32xf32>
      %108 = vector.broadcast %102 : vector<8x1xf32> to vector<8x32xf32>
      %109 = arith.mulf %107, %108 : vector<8x32xf32>
      %c0_47 = arith.constant 0 : index
      %c0_48 = arith.constant 0 : index
      %110 = vector.load %arg18[%c0_47, %c0_48] : memref<8x32xf32, #tpu.memory_space<vmem>>, vector<8x32xf32>
      %111 = vector.extract_strided_slice %29 {offsets = [96, 0], sizes = [32, 32], strides = [1, 1]} : vector<128x32xf32> to vector<32x32xf32>
      %cst_49 = arith.constant dense<0.000000e+00> : vector<8x32xf32>
      %112 = tpu.matmul %109, %111, %cst_49 {dimension_numbers = #tpu.dot_dimension_numbers<[1], [0], [0], [1], [0, 0, 1, 1], [], []>} : vector<8x32xf32>, vector<32x32xf32>, vector<8x32xf32> -> vector<8x32xf32>
      %113 = arith.addf %110, %112 : vector<8x32xf32>
      %c0_50 = arith.constant 0 : index
      %c0_51 = arith.constant 0 : index
      %114 = vector.load %arg18[%c0_50, %c0_51] : memref<8x32xf32, #tpu.memory_space<vmem>>, vector<8x32xf32>
      tpu.vector_store %arg18[%c0_50, %c0_51], %113 {strides = array<i32>} : memref<8x32xf32, #tpu.memory_space<vmem>>, vector<8x32xf32>,
    } else {
    }
    %c2_i32 = arith.constant 2 : i32
    %53 = arith.cmpi eq, %arg0, %c2_i32 : i32
    %c0_i32_29 = arith.constant 0 : i32
    %54 = arith.cmpi eq, %arg1, %c0_i32_29 : i32
    %55 = arith.andi %53, %54 : i1
    %56 = arith.extui %55 : i1 to i32
    %c0_i32_30 = arith.constant 0 : i32
    %57 = arith.cmpi ne, %56, %c0_i32_30 : i32
    scf.if %57 {
      %c0_31 = arith.constant 0 : index
      %c0_32 = arith.constant 0 : index
      %58 = vector.load %arg18[%c0_31, %c0_32] : memref<8x32xf32, #tpu.memory_space<vmem>>, vector<8x32xf32>
      %59 = vector.extract_strided_slice %22 {offsets = [5, 0], sizes = [1, 32], strides = [1, 1]} : vector<8x32xf32> to vector<1x32xf32>
      %60 = vector.broadcast %59 : vector<1x32xf32> to vector<8x32xf32>
      %61 = arith.addf %58, %60 : vector<8x32xf32>
      %62 = vector.extract_strided_slice %22 {offsets = [6, 0], sizes = [1, 32], strides = [1, 1]} : vector<8x32xf32> to vector<1x32xf32>
      %63 = vector.broadcast %62 : vector<1x32xf32> to vector<8x32xf32>
      %64 = arith.mulf %61, %63 : vector<8x32xf32>
      %65 = vector.extract_strided_slice %22 {offsets = [7, 0], sizes = [1, 32], strides = [1, 1]} : vector<8x32xf32> to vector<1x32xf32>
      %66 = vector.broadcast %65 : vector<1x32xf32> to vector<8x32xf32>
      %67 = arith.addf %64, %66 : vector<8x32xf32>
      %cst_33 = arith.constant 0.000000e+00 : f32
      %68 = vector.broadcast %cst_33 : f32 to vector<8x32xf32>
      %69 = arith.maximumf %67, %68 : vector<8x32xf32>
      %c0_34 = arith.constant 0 : index
      %c0_35 = arith.constant 0 : index
      %70 = vector.load %arg12[%c0_34, %c0_35] : memref<32x128xf32, #tpu.memory_space<vmem>>, vector<32x128xf32>
      %cst_36 = arith.constant dense<0.000000e+00> : vector<8x128xf32>
      %71 = tpu.matmul %69, %70, %cst_36 {dimension_numbers = #tpu.dot_dimension_numbers<[1], [0], [0], [1], [0, 0, 1, 1], [], []>} : vector<8x32xf32>, vector<32x128xf32>, vector<8x128xf32> -> vector<8x128xf32>
      %c0_37 = arith.constant 0 : index
      %c0_38 = arith.constant 0 : index
      %72 = vector.load %arg13[%c0_37, %c0_38] : memref<1x128xf32, #tpu.memory_space<vmem>>, vector<1x128xf32>
      %73 = vector.broadcast %72 : vector<1x128xf32> to vector<8x128xf32>
      %74 = arith.addf %71, %73 : vector<8x128xf32>
      %75 = tpu.iota {dimensions = array<i32: 1>} : vector<8x128xi32>
      %c4_i32 = arith.constant 4 : i32
      %76 = vector.broadcast %c4_i32 : i32 to vector<8x128xi32>
      %77 = arith.cmpi slt, %75, %76 : vector<8x128xi32>
      %cst_39 = arith.constant 0xFF800000 : f32
      %78 = vector.broadcast %cst_39 : f32 to vector<8x128xf32>
      %79 = arith.select %77, %74, %78 : vector<8x128xi1>, vector<8x128xf32>
      %cst_40 = arith.constant dense<0xFF800000> : vector<8xf32>
      %80 = vector.multi_reduction <maximumf>, %79, %cst_40 [1] : vector<8x128xf32> to vector<8xf32>
      %81 = vector.shape_cast %80 : vector<8xf32> to vector<8x1xf32>
      %82 = vector.broadcast %81 : vector<8x1xf32> to vector<8x128xf32>
      %83 = arith.subf %74, %82 : vector<8x128xf32>
      %84 = math.exp %83 : vector<8x128xf32>
      %cst_41 = arith.constant 0.000000e+00 : f32
      %85 = vector.broadcast %cst_41 : f32 to vector<8x128xf32>
      %86 = arith.select %77, %84, %85 : vector<8x128xi1>, vector<8x128xf32>
      %cst_42 = arith.constant dense<0.000000e+00> : vector<8xf32>
      %87 = vector.multi_reduction <add>, %86, %cst_42 [1] : vector<8x128xf32> to vector<8xf32>
      %88 = vector.shape_cast %87 : vector<8xf32> to vector<8x1xf32>
      %89 = math.log %88 : vector<8x1xf32>
      %90 = arith.addf %81, %89 : vector<8x1xf32>
      %91 = vector.broadcast %90 : vector<8x1xf32> to vector<8x128xf32>
      %92 = arith.subf %74, %91 : vector<8x128xf32>
      %cst_43 = arith.constant 0.000000e+00 : f32
      %93 = vector.broadcast %cst_43 : f32 to vector<8x128xf32>
      %94 = arith.select %77, %92, %93 : vector<8x128xi1>, vector<8x128xf32>
      %c0_44 = arith.constant 0 : index
      %c0_45 = arith.constant 0 : index
      %95 = vector.load %arg14[%c0_44, %c0_45] : memref<8x128xf32, #tpu.memory_space<vmem>>, vector<8x128xf32>
      tpu.vector_store %arg14[%c0_44, %c0_45], %94 {strides = array<i32>} : memref<8x128xf32, #tpu.memory_space<vmem>>, vector<8x128xf32>,
    } else {
    }
    return
  }
  func.func @transform_0(%arg0: i32, %arg1: i32) -> (i32, i32) {
    %c0_i32 = arith.constant 0 : i32
    %c0_i32_0 = arith.constant 0 : i32
    return %arg1, %c0_i32 : i32, i32
  }
  func.func @transform_1(%arg0: i32, %arg1: i32) -> (i32, i32) {
    %c0_i32 = arith.constant 0 : i32
    %c0_i32_0 = arith.constant 0 : i32
    return %c0_i32, %arg1 : i32, i32
  }
  func.func @transform_2(%arg0: i32, %arg1: i32) -> (i32, i32) {
    %c0_i32 = arith.constant 0 : i32
    %c0_i32_0 = arith.constant 0 : i32
    %c0_i32_1 = arith.constant 0 : i32
    return %c0_i32, %c0_i32_0 : i32, i32
  }
  func.func @transform_3(%arg0: i32, %arg1: i32) -> (i32, i32) {
    %c0_i32 = arith.constant 0 : i32
    %c0_i32_0 = arith.constant 0 : i32
    %c0_i32_1 = arith.constant 0 : i32
    return %c0_i32, %c0_i32_0 : i32, i32
  }
  func.func @transform_4(%arg0: i32, %arg1: i32) -> (i32, i32) {
    %c0_i32 = arith.constant 0 : i32
    %0 = arith.cmpi eq, %arg0, %c0_i32 : i32
    %c0_i32_0 = arith.constant 0 : i32
    %1 = arith.select %0, %arg1, %c0_i32_0 : i32
    %c0_i32_1 = arith.constant 0 : i32
    %c0_i32_2 = arith.constant 0 : i32
    return %1, %c0_i32_1 : i32, i32
  }
  func.func @transform_5(%arg0: i32, %arg1: i32) -> (i32, i32) {
    %c0_i32 = arith.constant 0 : i32
    %c0_i32_0 = arith.constant 0 : i32
    %c0_i32_1 = arith.constant 0 : i32
    return %c0_i32, %c0_i32_0 : i32, i32
  }
  func.func @transform_6(%arg0: i32, %arg1: i32) -> (i32, i32) {
    %c0_i32 = arith.constant 0 : i32
    %c0_i32_0 = arith.constant 0 : i32
    %c0_i32_1 = arith.constant 0 : i32
    return %c0_i32, %c0_i32_0 : i32, i32
  }
  func.func @transform_7(%arg0: i32, %arg1: i32) -> (i32, i32) {
    %c0_i32 = arith.constant 0 : i32
    %c0_i32_0 = arith.constant 0 : i32
    %c0_i32_1 = arith.constant 0 : i32
    return %c0_i32, %c0_i32_0 : i32, i32
  }
  func.func @transform_8(%arg0: i32, %arg1: i32) -> (i32, i32, i32) {
    %c0_i32 = arith.constant 0 : i32
    %c0_i32_0 = arith.constant 0 : i32
    %c0_i32_1 = arith.constant 0 : i32
    return %arg0, %c0_i32, %c0_i32_0 : i32, i32, i32
  }
  func.func @transform_9(%arg0: i32, %arg1: i32) -> (i32, i32, i32) {
    %c0_i32 = arith.constant 0 : i32
    %c0_i32_0 = arith.constant 0 : i32
    %c0_i32_1 = arith.constant 0 : i32
    return %arg0, %c0_i32, %c0_i32_0 : i32, i32, i32
  }
  func.func @transform_10(%arg0: i32, %arg1: i32) -> (i32, i32) {
    %c0_i32 = arith.constant 0 : i32
    %c0_i32_0 = arith.constant 0 : i32
    %c0_i32_1 = arith.constant 0 : i32
    return %c0_i32, %c0_i32_0 : i32, i32
  }
  func.func @transform_11(%arg0: i32, %arg1: i32) -> (i32, i32) {
    %c0_i32 = arith.constant 0 : i32
    %c0_i32_0 = arith.constant 0 : i32
    %c0_i32_1 = arith.constant 0 : i32
    return %c0_i32, %c0_i32_0 : i32, i32
  }
  func.func @transform_12(%arg0: i32, %arg1: i32) -> (i32, i32) {
    %c0_i32 = arith.constant 0 : i32
    %c0_i32_0 = arith.constant 0 : i32
    %c0_i32_1 = arith.constant 0 : i32
    return %c0_i32, %c0_i32_0 : i32, i32
  }
}

</mosaic_0001>

<bundles_post_ra>
// kernel: nested_gin_forward.1
= control target key start
LH: loop header
LB: loop body
LE: loop exit
PB: predicated region body
PF: predicated region fallthrough
CT: control target
= control target key end

     0   :  { %s4408_s21 = smov 0   ;;  %s4410_s22 = smov 0   ;;  %s5252_s0 = inlined_call_operand.vmem [shape: s32[48,1], index: 0, kind: input, shape index: {}]   ;;  %s5253_s1 = inlined_call_operand.vmem [shape: s32[1,48], index: 1, kind: input, shape index: {}]   ;;  %s5254_s2 = inlined_call_operand.vmem [shape: s32[1,24], index: 2, kind: input, shape index: {}]   ;;  %s5255_s3 = inlined_call_operand.vmem [shape: f32[24,32], index: 3, kind: input, shape index: {}]   ;;  %s5256_s4 = inlined_call_operand.vmem [shape: bf16[48,1920], index: 4, kind: input, shape index: {}]   ;;  %s5257_s5 = inlined_call_operand.vmem [shape: bf16[1920,32], index: 5, kind: input, shape index: {}]   ;;  %s5258_s6 = inlined_call_operand.vmem [shape: f32[32,32], index: 6, kind: input, shape index: {}]   ;;  %s5259_s7 = inlined_call_operand.vmem [shape: f32[8,32], index: 7, kind: input, shape index: {}]   ;;  %s5260_s8 = inlined_call_operand.vmem [shape: f32[3,128,32], index: 8, kind: input, shape index: {}]   ;;  %s5261_s9 = inlined_call_operand.vmem [shape: f32[3,8,32], index: 9, kind: input, shape index: {}]   ;;  %s5262_s10 = inlined_call_operand.vmem [shape: f32[32,128], index: 10, kind: input, shape index: {}]   ;;  %s5263_s11 = inlined_call_operand.vmem [shape: f32[1,128], index: 11, kind: input, shape index: {}]   ;;  %s5264_s12 = inlined_call_operand.vmem [shape: f32[8,128], index: 12, kind: output, shape index: {}]  }
   0x1   :  { %s4412_s23 = smov 0  }
   0x2 LB: > { %s34_s24 = sadd.s32 1, %s4327_s22  ;;  %p3363_p0 = scmp.ge.s32.totalorder %s4331_s23, 1  ;;  %s4331_s23 = sphi %s4412_s23, %s22_s23   ;;  %s4327_s22 = sphi %s4410_s22, %s5266_s22   ;;  %s4323_s21 = sphi %s4408_s21, %s5265_s21  }
   0x3   : > { %p36_p1 = scmp.ge.s32.totalorder %s34_s24, 3  ;;  %p417_p2 = scmp.lt.s32.totalorder %s4331_s23, 4 }
   0x5   : > { %s5268_s24 = smov (%p36_p1, %s34_s24), 0  ;;  %p418_p3 = pnand %p3363_p0, %p417_p2 }
   0x6   : > { %p494_p4 = scmp.lt.s32.totalorder (!%p418_p3), %s4323_s21, 2  ;;  %p504_p5 = scmp.eq.s32.totalorder (!%p418_p3), %s4323_s21, 0 }
   0x7   : > { %421 = sbr.rel (%p418_p3) target bundleno = 2622 (0xa3e), region = 68 }
   0xe   : > { %s495_s25 = scalar_select %p494_p4, %s4323_s21, 2 }
   0xf   : > { %509 = sbr.rel (!%p504_p5) target bundleno = 22 (0x16), region = 72  ;;  %v510_v0 = vld [vmem:[%s5255_s3] sm:$0xff] (%p504_p5)  ;;  %vm513_vm0 = vcmask (%p504_p5), 261120   ;;  %v511_v1 = vld [vmem:[%s5255_s3 + $0x8] sm:$0xff] (%p504_p5)  ;;  %v512_v2 = vld [vmem:[%s5255_s3 + $0x10] sm:$0xff] (%p504_p5)  ;;  %v4333_v3 = vmov (%p504_p5), 0.0  }
  0x10   : > { %s3576_s26 = sshll.u32 %s495_s25, 7  ;;  %s3366_s27 = sshll.u32 %s495_s25, 3  ;;  %514 = vst.msk [vmem:[#allocation2] sm:$0xff] (%p504_p5), %vm513_vm0, %v510_v0  ;;  %515 = vst.msk [vmem:[#allocation2 + $0x8] sm:$0xff] (%p504_p5), %vm513_vm0, %v511_v1 }
  0x11   : > { %s4434_s30 = scalar_lea.vmem %s5260_s8, %s3576_s26  ;;  %s4439_s15 = scalar_lea.vmem %s5261_s9, %s3366_s27  ;;  %516 = vst.msk [vmem:[#allocation2 + $0x10] sm:$0xff] (%p504_p5), %vm513_vm0, %v512_v2  ;;  %517 = vst.msk [vmem:[#allocation5] sm:$0xff] (%p504_p5), %vm513_vm0, %v4333_v3 }
  0x16 PF: > { %v529_v4 = vld [vmem:[%s5252_s0 + $0x10] sm:$0xff]  ;;  %v527_v5 = vld [vmem:[%s5252_s0] sm:$0xff]  ;;  %v4334_v6 = vmov 0   ;;  %vm521_vm1 = vcmask 261120   ;;  %v525_v7 = vlaneseq  ;;  %v4335_v9 = vmov 0.0   ;;  %v530_v10 = vld [vmem:[%s5252_s0 + $0x18] sm:$0xff] }
  0x17   : > { %4116 = vset.pattern.permute.xlu1 %v4334_v6  ;;  %4115 = vset.pattern.permute.xlu0 %v4334_v6  ;;  %v3374_v8 = vld [vmem:[%s5253_s1] ss:$0 sm:$0xff]  ;;  %522 = vst.msk [vmem:[#allocation3] sm:$0xff] %vm521_vm1, %v4335_v9  ;;  %523 = vst.msk [vmem:[#allocation3 + $0x8] sm:$0xff] %vm521_vm1, %v4335_v9  ;;  %v528_v11 = vld [vmem:[%s5252_s0 + $0x8] sm:$0xff]  ;;  %p3378_p6 = scmp.ne.s32.totalorder %s4323_s21, 0 }
  0x18   : > { %540 = vperm.xlu1 %4116, %v529_v4   ;;  %534 = vperm.xlu0 %4115, %v527_v5   ;;  %524 = vst.msk [vmem:[#allocation3 + $0x10] sm:$0xff] %vm521_vm1, %v4335_v9  ;;  %v4471_v12 = vshrl.u32 %v525_v7, 7  ;;  %v532_v16 = vld [vmem:[%s5252_s0 + $0x28] sm:$0xff]  ;;  %v531_v17 = vld [vmem:[%s5252_s0 + $0x20] sm:$0xff]  ;;  %v4500_v23 = vand.u32 127, %v525_v7  ;;  %v4125_v47 = vld [vmem:[%s5257_s5 + $0x50] sm:$0xff] (!%p3378_p6)  }
  0x19   : > { %v4498_v22 = vld [vmem:[%s5259_s7] sm:$0xff]  ;;  %v4121_v43 = vld [vmem:[%s5257_s5 + $0x48] sm:$0xff] (!%p3378_p6)   ;;  %v4126_v48 = vld [vmem:[%s5257_s5 + $0xd0] sm:$0xff] (!%p3378_p6)   ;;  %vm4337_vm11 = vmmov (!%p3378_p6), 0  }
  0x1a   : > { %v574_v13 = vadd.s32 8, %v4471_v12  ;;  %v575_v14 = vadd.s32 16, %v4471_v12  ;;  %vm581_vm2 = vcmp.eq.s32.totalorder %v3374_v8, %v4471_v12  ;;  %v4117_v39 = vld [vmem:[%s5257_s5 + $0x40] sm:$0xff] (!%p3378_p6)   ;;  %v4122_v44 = vld [vmem:[%s5257_s5 + $0xc8] sm:$0xff] (!%p3378_p6)   ;;  %v4127_v49 = vld [vmem:[%s5257_s5 + $0x10] sm:$0xff] (!%p3378_p6)  }
  0x1b   : > { %v4477_v15 = vsel %vm581_vm2, 1.0, %v4335_v9  ;;  %v4118_v40 = vld [vmem:[%s5257_s5 + $0xc0] sm:$0xff] (!%p3378_p6)   ;;  %3579 = vmatprep.subr.bf16.mxu0 (!%p3378_p6), %v4117_v39  ;;  %v4123_v45 = vld [vmem:[%s5257_s5 + $0x8] sm:$0xff] (!%p3378_p6)   ;;  %v4128_v50 = vld [vmem:[%s5257_s5 + $0x90] sm:$0xff] (!%p3378_p6)  }
  0x1c   : > { %543 = vperm.xlu1 %4116, %v530_v10   ;;  %537 = vperm.xlu0 %4115, %v528_v11   ;;  %vm582_vm3 = vcmp.eq.s32.totalorder %v3374_v8, %v574_v13  ;;  %vm583_vm4 = vcmp.eq.s32.totalorder %v3374_v8, %v575_v14  ;;  %v4119_v41 = vld [vmem:[%s5257_s5] sm:$0xff] (!%p3378_p6)   ;;  %v4124_v46 = vld [vmem:[%s5257_s5 + $0x88] sm:$0xff] (!%p3378_p6)   ;;  %v4129_v51 = vld [vmem:[%s5257_s5 + $0x58] sm:$0xff] (!%p3378_p6)  }
  0x1d   : > { %v4486_v18 = vsel %vm582_vm3, 1.0, %v4335_v9  ;;  %v4489_v19 = vsel %vm583_vm4, 1.0, %v4335_v9  ;;  %3613 = vmatprep.subr.bf16.mxu1 (!%p3378_p6), %v4118_v40  ;;  %v4120_v42 = vld [vmem:[%s5257_s5 + $0x80] sm:$0xff] (!%p3378_p6)   ;;  %3580 = vmatpush3.bf16.msra.mxu0 (!%p3378_p6), %v4119_v41  ;;  %v4130_v52 = vld [vmem:[%s5257_s5 + $0xd8] sm:$0xff] (!%p3378_p6)   ;;  %v4137_v59 = vld [vmem:[%s5257_s5 + $0x68] sm:$0xff] (!%p3378_p6)  }
  0x1e   : > { %v590_v20 = vpack.c.bf16 %v4486_v18, %v4477_v15  ;;  %v591_v21 = vpack.c.bf16 %v4489_v19, %v4489_v19  ;;  %3614 = vmatpush3.bf16.msra.mxu1 (!%p3378_p6), %v4120_v42  ;;  %3581 = vmatprep.subr.bf16.mxu0 (!%p3378_p6), %v4121_v43  ;;  %v4131_v53 = vld [vmem:[%s5257_s5 + $0x18] sm:$0xff] (!%p3378_p6)   ;;  %v4133_v55 = vld [vmem:[%s5257_s5 + $0x60] sm:$0xff] (!%p3378_p6)   ;;  %v4138_v60 = vld [vmem:[%s5257_s5 + $0xe8] sm:$0xff] (!%p3378_p6)  }
  0x1f   : > { %3615 = vmatprep.subr.bf16.mxu1 (!%p3378_p6), %v4122_v44  ;;  %v4132_v54 = vld [vmem:[%s5257_s5 + $0x98] sm:$0xff] (!%p3378_p6)   ;;  %v4134_v56 = vld [vmem:[%s5257_s5 + $0xe0] sm:$0xff] (!%p3378_p6)   ;;  %v4139_v61 = vld [vmem:[%s5257_s5 + $0x28] sm:$0xff] (!%p3378_p6)  }
  0x20   : > { %549 = vperm.xlu1 %4116, %v532_v16   ;;  %546 = vperm.xlu0 %4115, %v531_v17   ;;  %v4135_v57 = vld [vmem:[%s5257_s5 + $0x20] sm:$0xff] (!%p3378_p6)   ;;  %v4140_v62 = vld [vmem:[%s5257_s5 + $0xa8] sm:$0xff] (!%p3378_p6)   ;;  %v4141_v63 = vld [vmem:[%s5257_s5 + $0x70] sm:$0xff] (!%p3378_p6)  }
  0x21   : > { %3582 = vmatpush3.bf16.msra.mxu0 (!%p3378_p6), %v4123_v45  ;;  %v4136_v58 = vld [vmem:[%s5257_s5 + $0xa0] sm:$0xff] (!%p3378_p6)   ;;  %v4142_v0 = vld [vmem:[%s5257_s5 + $0xf0] sm:$0xff] (!%p3378_p6)   ;;  %v4145_v3 = vld [vmem:[%s5257_s5 + $0x78] sm:$0xff] (!%p3378_p6)  }
  0x22   : > { %3616 = vmatpush3.bf16.msra.mxu1 (!%p3378_p6), %v4124_v46  ;;  %3583 = vmatprep.subr.bf16.mxu0 (!%p3378_p6), %v4125_v47  ;;  %v4143_v1 = vld [vmem:[%s5257_s5 + $0x30] sm:$0xff] (!%p3378_p6)   ;;  %v4146_v4 = vld [vmem:[%s5257_s5 + $0xf8] sm:$0xff] (!%p3378_p6)   ;;  %v4151_v8 = vld [vmem:[%s5256_s4 + $0x4] ss:$60 sps:$4 sm:$0xff] (!%p3378_p6)  }
  0x23   : > { %3617 = vmatprep.subr.bf16.mxu1 (!%p3378_p6), %v4126_v48  ;;  %v4144_v2 = vld [vmem:[%s5257_s5 + $0xb0] sm:$0xff] (!%p3378_p6)   ;;  %v4147_v5 = vld [vmem:[%s5257_s5 + $0x38] sm:$0xff] (!%p3378_p6)   ;;  %v4152_v10 = vld [vmem:[%s5256_s4 + $0x8] ss:$60 sps:$4 sm:$0xff] (!%p3378_p6)   ;;  %1865 = vmatprep.mubr.bf16.mxu0 (!%p3378_p6), %v4151_v8 }
  0x24   : > { %v4148_v6 = vld [vmem:[%s5257_s5 + $0xb8] sm:$0xff] (!%p3378_p6)   ;;  %v4154_v11 = vld [vmem:[%s5256_s4 + $0xc] ss:$60 sps:$4 sm:$0xff] (!%p3378_p6)   ;;  %v4155_v13 = vld [vmem:[%s5257_s5 + $0x140] sm:$0xff] (!%p3378_p6)  }
  0x25   : > { %3584 = vmatpush3.bf16.msra.mxu0 (!%p3378_p6), %v4127_v49  ;;  %v4149_v7 = vld [vmem:[%s5256_s4] ss:$60 sps:$4 sm:$0xff] (!%p3378_p6)   ;;  %1922 = vmatprep.mubr.bf16.mxu1 (!%p3378_p6), %v4154_v11  ;;  %v4165_v39 = vld [vmem:[%s5257_s5 + $0x1d0] sm:$0xff] (!%p3378_p6)  }
  0x26   : > { %3618 = vmatpush3.bf16.msra.mxu1 (!%p3378_p6), %v4128_v50  ;;  %3585 = vmatprep.subr.bf16.mxu0 (!%p3378_p6), %v4129_v51  ;;  %v4156_v14 = vld [vmem:[%s5257_s5 + $0x100] sm:$0xff] (!%p3378_p6)   ;;  %v4166_v40 = vld [vmem:[%s5257_s5 + $0x190] sm:$0xff] (!%p3378_p6)   ;;  %v4167_v41 = vld [vmem:[%s5257_s5 + $0x158] sm:$0xff] (!%p3378_p6)  }
  0x27   : > { %3619 = vmatprep.subr.bf16.mxu1 (!%p3378_p6), %v4130_v52  ;;  %v4157_v16 = vld [vmem:[%s5257_s5 + $0x1c0] sm:$0xff] (!%p3378_p6)   ;;  %v4168_v42 = vld [vmem:[%s5256_s4 + $0x7c] ss:$60 sps:$4 sm:$0xff] (!%p3378_p6)  }
  0x28   : > { %v4158_v17 = vld [vmem:[%s5257_s5 + $0x180] sm:$0xff] (!%p3378_p6)   ;;  %v4172_v44 = vld [vmem:[%s5257_s5 + $0x118] sm:$0xff] (!%p3378_p6)  }
  0x29   : > { %3586 = vmatpush3.bf16.msra.mxu0 (!%p3378_p6), %v4131_v53  ;;  %v4170_v43 = vld [vmem:[%s5256_s4 + $0x84] ss:$60 sps:$4 sm:$0xff] (!%p3378_p6)   ;;  %v4173_v45 = vld [vmem:[%s5256_s4 + $0x78] ss:$60 sps:$4 sm:$0xff] (!%p3378_p6)   ;;  %v4181_v53 = vld [vmem:[%s5257_s5 + $0x168] sm:$0xff] (!%p3378_p6)  }
  0x2a   : > { %3620 = vmatpush3.bf16.msra.mxu1 (!%p3378_p6), %v4132_v54  ;;  %3587 = vmatprep.subr.bf16.mxu0 (!%p3378_p6), %v4133_v55  ;;  %v4174_v46 = vld [vmem:[%s5256_s4 + $0x80] ss:$60 sps:$4 sm:$0xff] (!%p3378_p6)   ;;  %v4182_v54 = vld [vmem:[%s5256_s4 + $0xf4] ss:$60 sps:$4 sm:$0xff] (!%p3378_p6)  }
  0x2b   : > { %3621 = vmatprep.subr.bf16.mxu1 (!%p3378_p6), %v4134_v56  ;;  %v4175_v47 = vld [vmem:[%s5257_s5 + $0x1d8] sm:$0xff] (!%p3378_p6)   ;;  %v4177_v49 = vld [vmem:[%s5257_s5 + $0x160] sm:$0xff] (!%p3378_p6)   ;;  %v4186_v56 = vld [vmem:[%s5257_s5 + $0x128] sm:$0xff] (!%p3378_p6)  }
  0x2c   : > { %v4176_v48 = vld [vmem:[%s5257_s5 + $0x198] sm:$0xff] (!%p3378_p6)   ;;  %v4178_v50 = vld [vmem:[%s5257_s5 + $0x120] sm:$0xff] (!%p3378_p6)  }
  0x2d   : > { %3588 = vmatpush3.bf16.msra.mxu0 (!%p3378_p6), %v4135_v57  ;;  %v4179_v51 = vld [vmem:[%s5257_s5 + $0x1e0] sm:$0xff] (!%p3378_p6)   ;;  %v4184_v55 = vld [vmem:[%s5256_s4 + $0xfc] ss:$60 sps:$4 sm:$0xff] (!%p3378_p6)   ;;  %v4187_v57 = vld [vmem:[%s5256_s4 + $0xf0] ss:$60 sps:$4 sm:$0xff] (!%p3378_p6)  }
  0x2e   : > { %3622 = vmatpush3.bf16.msra.mxu1 (!%p3378_p6), %v4136_v58  ;;  %3589 = vmatprep.subr.bf16.mxu0 (!%p3378_p6), %v4137_v59  ;;  %v4180_v52 = vld [vmem:[%s5257_s5 + $0x1a0] sm:$0xff] (!%p3378_p6)   ;;  %v4188_v58 = vld [vmem:[%s5256_s4 + $0xf8] ss:$60 sps:$4 sm:$0xff] (!%p3378_p6)   ;;  %v4189_v59 = vld [vmem:[%s5257_s5 + $0x1e8] sm:$0xff] (!%p3378_p6)  }
  0x2f   : > { %3623 = vmatprep.subr.bf16.mxu1 (!%p3378_p6), %v4138_v60  ;;  %v4190_v60 = vld [vmem:[%s5257_s5 + $0x1a8] sm:$0xff] (!%p3378_p6)   ;;  %v4203_v8 = vld [vmem:[%s5256_s4 + $0x18] ss:$60 sps:$4 sm:$0xff] (!%p3378_p6)   ;;  %v4206_v11 = vld [vmem:[%s5257_s5 + $0x200] sm:$0xff] (!%p3378_p6)  }
  0x31   : > { %3590 = vmatpush3.bf16.msra.mxu0 (!%p3378_p6), %v4139_v61  ;;  %v4191_v61 = vld [vmem:[%s5257_s5 + $0x170] sm:$0xff] (!%p3378_p6)  }
  0x32   : > { %3624 = vmatpush3.bf16.msra.mxu1 (!%p3378_p6), %v4140_v62  ;;  %3591 = vmatprep.subr.bf16.mxu0 (!%p3378_p6), %v4141_v63  ;;  %v4192_v62 = vld [vmem:[%s5257_s5 + $0x130] sm:$0xff] (!%p3378_p6)  }
  0x33   : > { %3625 = vmatprep.subr.bf16.mxu1 (!%p3378_p6), %v4142_v0  ;;  %v4193_v63 = vld [vmem:[%s5257_s5 + $0x1f0] sm:$0xff] (!%p3378_p6)  }
  0x34   : > { %v4194_v0 = vld [vmem:[%s5257_s5 + $0x1b0] sm:$0xff] (!%p3378_p6)  }
  0x35   : > { %3592 = vmatpush3.bf16.msra.mxu0 (!%p3378_p6), %v4143_v1  ;;  %v4195_v1 = vld [vmem:[%s5257_s5 + $0x178] sm:$0xff] (!%p3378_p6)  }
  0x36   : > { %3626 = vmatpush3.bf16.msra.mxu1 (!%p3378_p6), %v4144_v2  ;;  %3593 = vmatprep.subr.bf16.mxu0 (!%p3378_p6), %v4145_v3  ;;  %v4196_v2 = vld [vmem:[%s5257_s5 + $0x138] sm:$0xff] (!%p3378_p6)  }
  0x37   : > { %3627 = vmatprep.subr.bf16.mxu1 (!%p3378_p6), %v4146_v4  ;;  %v4197_v3 = vld [vmem:[%s5257_s5 + $0x1f8] sm:$0xff] (!%p3378_p6)   ;;  %v4198_v4 = vld [vmem:[%s5256_s4 + $0x10] ss:$60 sps:$4 sm:$0xff] (!%p3378_p6)  }
  0x39   : > { %3594 = vmatpush3.bf16.msra.mxu0 (!%p3378_p6), %v4147_v5  ;;  %v4200_v5 = vld [vmem:[%s5256_s4 + $0x14] ss:$60 sps:$4 sm:$0xff] (!%p3378_p6)  }
  0x3a   : > { %3628 = vmatpush3.bf16.msra.mxu1 (!%p3378_p6), %v4148_v6  ;;  %3647 = vmatprep.subr.bf16.mxu0 (!%p3378_p6), %v4155_v13  ;;  %v4201_v6 = vld [vmem:[%s5257_s5 + $0x1b8] sm:$0xff] (!%p3378_p6)   ;;  %v4207_v13 = vld [vmem:[%s5257_s5 + $0x2c0] sm:$0xff] (!%p3378_p6)  }
  0x3b   : > { %3681 = vmatprep.subr.bf16.mxu1 (!%p3378_p6), %v4157_v16  ;;  %v4209_v16 = vld [vmem:[%s5257_s5 + $0x248] sm:$0xff] (!%p3378_p6)  }
  0x3c   : > { %1866 = vmatmul.mubr.bf16.vlgmr.msra.gmra.mrb[0].mxu0 (!%p3378_p6), %v4149_v7  ;;  %v4202_v7 = vld [vmem:[%s5257_s5 + $0x240] sm:$0xff] (!%p3378_p6)  }
  0x3d   : > { %1923 = vmatmul.mubr.bf16.vlgmr.msra.gmra.mrb[0].mxu1 (!%p3378_p6), %v4152_v10  ;;  %3648 = vmatpush3.bf16.msra.mxu0 (!%p3378_p6), %v4156_v14  ;;  %v4205_v10 = vld [vmem:[%s5256_s4 + $0x1c] ss:$60 sps:$4 sm:$0xff] (!%p3378_p6)   ;;  %v4208_v14 = vld [vmem:[%s5257_s5 + $0x280] sm:$0xff] (!%p3378_p6)  }
  0x3e   : > { %3682 = vmatpush3.bf16.msra.mxu1 (!%p3378_p6), %v4158_v17  ;;  %1873 = vmatprep.mubr.bf16.mxu0 (!%p3378_p6), %v4168_v42  ;;  %v4210_v17 = vld [vmem:[%s5257_s5 + $0x208] sm:$0xff] (!%p3378_p6)   ;;  %v4222_v42 = vld [vmem:[%s5257_s5 + $0x290] sm:$0xff] (!%p3378_p6)  }
  0x3f   : > { %1930 = vmatprep.mubr.bf16.mxu1 (!%p3378_p6), %v4170_v43  ;;  %v4223_v43 = vld [vmem:[%s5257_s5 + $0x258] sm:$0xff] (!%p3378_p6)  }
  0x44   : > { %1874 = vmatmul.mubr.bf16.gmra.mrb[4].mxu0 (!%p3378_p6), %v4173_v45  ;;  %v4225_v45 = vld [vmem:[%s5257_s5 + $0x2d8] sm:$0xff] (!%p3378_p6)  }
  0x45   : > { %1931 = vmatmul.mubr.bf16.gmra.mrb[4].mxu1 (!%p3378_p6), %v4174_v46  ;;  %1881 = vmatprep.mubr.bf16.mxu0 (!%p3378_p6), %v4182_v54  ;;  %v4226_v46 = vld [vmem:[%s5256_s4 + $0x104] ss:$60 sps:$4 sm:$0xff] (!%p3378_p6)  }
  0x46   : > { %1938 = vmatprep.mubr.bf16.mxu1 (!%p3378_p6), %v4184_v55  ;;  %v4236_v54 = vld [vmem:[%s5257_s5 + $0x2a0] sm:$0xff] (!%p3378_p6)   ;;  %v4237_v55 = vld [vmem:[%s5257_s5 + $0x268] sm:$0xff] (!%p3378_p6)  }
  0x4c   : > { %1882 = vmatmul.mubr.bf16.gmra.mrb[8].mxu0 (!%p3378_p6), %v4187_v57  ;;  %v4239_v57 = vld [vmem:[%s5257_s5 + $0x2e8] sm:$0xff] (!%p3378_p6)  }
  0x4d   : > { %1939 = vmatmul.mubr.bf16.gmra.mrb[8].mxu1 (!%p3378_p6), %v4188_v58  ;;  %1979 = vmatprep.mubr.bf16.mxu0 (!%p3378_p6), %v4200_v5  ;;  %v4240_v58 = vld [vmem:[%s5257_s5 + $0x2a8] sm:$0xff] (!%p3378_p6)   ;;  %v4252_v5 = vld [vmem:[%s5257_s5 + $0x340] sm:$0xff] (!%p3378_p6)  }
  0x4e   : > { %2036 = vmatprep.mubr.bf16.mxu1 (!%p3378_p6), %v4205_v10  ;;  %v4336_v10 = vmov (!%p3378_p6), 0.0  }
  0x97   : > { %v541_v24 = vpop.permute.xlu1 %540  ;;  %v535_v25 = vpop.permute.xlu0 %534 }
  0x98   : > { %vm553_vm5 = vcmp.eq.s32.totalorder %v541_v24, %v4500_v23  ;;  %vm551_vm6 = vcmp.eq.s32.totalorder %v535_v25, %v4500_v23  ;;  %v4159_v24 = vld [vmem:[%s5257_s5 + $0x148] sm:$0xff] (!%p3378_p6)  }
  0x99   : > { %v4507_v28 = vsel %vm553_vm5, 1.0, %v4335_v9  ;;  %v4510_v29 = vsel %vm551_vm6, 1.0, %v4335_v9  ;;  %v4160_v25 = vld [vmem:[%s5257_s5 + $0x108] sm:$0xff] (!%p3378_p6)   ;;  %3649 = vmatprep.subr.bf16.mxu0 (!%p3378_p6), %v4159_v24 }
  0x9a   : > { %3650 = vmatpush3.bf16.msra.mxu0 (!%p3378_p6), %v4160_v25  ;;  %v4211_v24 = vld [vmem:[%s5257_s5 + $0x2c8] sm:$0xff] (!%p3378_p6)  }
  0x9b   : > { %v544_v26 = vpop.permute.xlu1 %543  ;;  %v538_v27 = vpop.permute.xlu0 %537  ;;  %v4212_v25 = vld [vmem:[%s5256_s4 + $0x8c] ss:$60 sps:$4 sm:$0xff] (!%p3378_p6)  }
  0x9c   : > { %vm554_vm7 = vcmp.eq.s32.totalorder %v544_v26, %v4500_v23  ;;  %vm552_vm8 = vcmp.eq.s32.totalorder %v538_v27, %v4500_v23  ;;  %596 = sbr.rel (%p3378_p6) target bundleno = 714 (0x2ca), region = 80  ;;  %v4161_v26 = vld [vmem:[%s5257_s5 + $0x1c8] sm:$0xff] (!%p3378_p6)  }
  0x9d   : > { %v4513_v30 = vsel %vm554_vm7, 1.0, %v4335_v9  ;;  %v4516_v31 = vsel %vm552_vm8, 1.0, %v4335_v9  ;;  %v4162_v27 = vld [vmem:[%s5257_s5 + $0x188] sm:$0xff] (!%p3378_p6)   ;;  %3683 = vmatprep.subr.bf16.mxu1 (!%p3378_p6), %v4161_v26 }
  0x9e   : > { %v570_v32 = vpack.c.bf16 %v4513_v30, %v4507_v28  ;;  %v569_v33 = vpack.c.bf16 %v4516_v31, %v4510_v29  ;;  %3684 = vmatpush3.bf16.msra.mxu1 (!%p3378_p6), %v4162_v27  ;;  %v4214_v26 = vld [vmem:[%s5257_s5 + $0x288] sm:$0xff] (!%p3378_p6)  }
  0x9f   : > { %v550_v34 = vpop.permute.xlu1 %549  ;;  %v547_v35 = vpop.permute.xlu0 %546  ;;  %3685 = vmatprep.subr.bf16.mxu1 (!%p3378_p6), %v4165_v39  ;;  %v4215_v27 = vld [vmem:[%s5256_s4 + $0x88] ss:$60 sps:$4 sm:$0xff] (!%p3378_p6)   ;;  %v4219_v39 = vld [vmem:[%s5257_s5 + $0x210] sm:$0xff] (!%p3378_p6)  }
  0xa0   : > { %vm556_vm9 = vcmp.eq.s32.totalorder %v550_v34, %v4500_v23  ;;  %vm555_vm10 = vcmp.eq.s32.totalorder %v547_v35, %v4500_v23  ;;  %v4163_v34 = vld [vmem:[%s5257_s5 + $0x150] sm:$0xff] (!%p3378_p6)  }
  0xa1   : > { %v4525_v36 = vsel %vm556_vm9, 1.0, %v4335_v9  ;;  %v4528_v37 = vsel %vm555_vm10, 1.0, %v4335_v9  ;;  %v4164_v35 = vld [vmem:[%s5257_s5 + $0x110] sm:$0xff] (!%p3378_p6)   ;;  %3651 = vmatprep.subr.bf16.mxu0 (!%p3378_p6), %v4163_v34 }
  0xa2   : > { %v571_v38 = vpack.c.bf16 %v4525_v36, %v4528_v37  ;;  %3652 = vmatpush3.bf16.msra.mxu0 (!%p3378_p6), %v4164_v35  ;;  %3686 = vmatpush3.bf16.msra.mxu1 (!%p3378_p6), %v4166_v40  ;;  %v4216_v34 = vld [vmem:[%s5257_s5 + $0x250] sm:$0xff] (!%p3378_p6)  }
  0xa3   : > { %3653 = vmatprep.subr.bf16.mxu0 %v4167_v41  ;;  %3687 = vmatprep.subr.bf16.mxu1 %v4175_v47  ;;  %v4217_v35 = vld [vmem:[%s5256_s4 + $0x94] ss:$60 sps:$4 sm:$0xff]   ;;  %v4228_v47 = vld [vmem:[%s5257_s5 + $0x298] sm:$0xff]  }
  0xa4   : > { %v4220_v40 = vld [vmem:[%s5256_s4 + $0x90] ss:$60 sps:$4 sm:$0xff]  }
  0xa5   : > { %v4221_v41 = vld [vmem:[%s5257_s5 + $0x2d0] sm:$0xff]  }
  0xa6   : > { %3654 = vmatpush3.bf16.msra.mxu0 %v4172_v44  ;;  %3688 = vmatpush3.bf16.msra.mxu1 %v4176_v48  ;;  %v4224_v44 = vld [vmem:[%s5257_s5 + $0x218] sm:$0xff]  }
  0xa7   : > { %3655 = vmatprep.subr.bf16.mxu0 %v4177_v49  ;;  %3689 = vmatprep.subr.bf16.mxu1 %v4179_v51  ;;  %v4229_v48 = vld [vmem:[%s5256_s4 + $0x100] ss:$60 sps:$4 sm:$0xff]  }
  0xa8   : > { %v4230_v49 = vld [vmem:[%s5257_s5 + $0x260] sm:$0xff]  }
  0xa9   : > { %v4233_v51 = vld [vmem:[%s5257_s5 + $0x220] sm:$0xff]  }
  0xaa   : > { %3656 = vmatpush3.bf16.msra.mxu0 %v4178_v50  ;;  %3690 = vmatpush3.bf16.msra.mxu1 %v4180_v52  ;;  %v4231_v50 = vld [vmem:[%s5256_s4 + $0x10c] ss:$60 sps:$4 sm:$0xff]  }
  0xab   : > { %3657 = vmatprep.subr.bf16.mxu0 %v4181_v53  ;;  %3691 = vmatprep.subr.bf16.mxu1 %v4189_v59  ;;  %v4234_v52 = vld [vmem:[%s5256_s4 + $0x108] ss:$60 sps:$4 sm:$0xff]   ;;  %v4241_v59 = vld [vmem:[%s5257_s5 + $0x270] sm:$0xff]  }
  0xac   : > { %v4235_v53 = vld [vmem:[%s5257_s5 + $0x2e0] sm:$0xff]  }
  0xae   : > { %3658 = vmatpush3.bf16.msra.mxu0 %v4186_v56  ;;  %3692 = vmatpush3.bf16.msra.mxu1 %v4190_v60  ;;  %v4238_v56 = vld [vmem:[%s5257_s5 + $0x228] sm:$0xff]   ;;  %v4242_v60 = vld [vmem:[%s5257_s5 + $0x230] sm:$0xff]  }
  0xaf   : > { %3659 = vmatprep.subr.bf16.mxu0 %v4191_v61  ;;  %3693 = vmatprep.subr.bf16.mxu1 %v4193_v63  ;;  %v4243_v61 = vld [vmem:[%s5257_s5 + $0x2f0] sm:$0xff]   ;;  %v4245_v63 = vld [vmem:[%s5257_s5 + $0x278] sm:$0xff]  }
  0xb2   : > { %3660 = vmatpush3.bf16.msra.mxu0 %v4192_v62  ;;  %3694 = vmatpush3.bf16.msra.mxu1 %v4194_v0  ;;  %v4244_v62 = vld [vmem:[%s5257_s5 + $0x2b0] sm:$0xff]   ;;  %v4246_v0 = vld [vmem:[%s5257_s5 + $0x238] sm:$0xff]  }
  0xb3   : > { %3661 = vmatprep.subr.bf16.mxu0 %v4195_v1  ;;  %3695 = vmatprep.subr.bf16.mxu1 %v4197_v3  ;;  %v4247_v1 = vld [vmem:[%s5257_s5 + $0x2f8] sm:$0xff]   ;;  %v4250_v3 = vld [vmem:[%s5256_s4 + $0x24] ss:$60 sps:$4 sm:$0xff]  }
  0xb6   : > { %3662 = vmatpush3.bf16.msra.mxu0 %v4196_v2  ;;  %3696 = vmatpush3.bf16.msra.mxu1 %v4201_v6  ;;  %v4248_v2 = vld [vmem:[%s5256_s4 + $0x20] ss:$60 sps:$4 sm:$0xff]   ;;  %v4253_v6 = vld [vmem:[%s5256_s4 + $0x28] ss:$60 sps:$4 sm:$0xff]  }
  0xb7   : > { %3715 = vmatprep.subr.bf16.mxu0 %v4202_v7  ;;  %3749 = vmatprep.subr.bf16.mxu1 %v4207_v13  ;;  %v4255_v7 = vld [vmem:[%s5256_s4 + $0x2c] ss:$60 sps:$4 sm:$0xff]  }
  0xb8   : > { %v4258_v13 = vld [vmem:[%s5257_s5 + $0x348] sm:$0xff]  }
  0xb9   : > { %1980 = vmatmul.mubr.bf16.vlgmr.msra.gmra.mrb[12].mxu0 %v4198_v4  ;;  %2037 = vmatmul.mubr.bf16.vlgmr.msra.gmra.mrb[12].mxu1 %v4203_v8  ;;  %v4251_v4 = vld [vmem:[%s5257_s5 + $0x2b8] sm:$0xff]   ;;  %v4256_v8 = vld [vmem:[%s5257_s5 + $0x300] sm:$0xff]  }
  0xba   : > { %3716 = vmatpush3.bf16.msra.mxu0 %v4206_v11  ;;  %3750 = vmatpush3.bf16.msra.mxu1 %v4208_v14  ;;  %v4257_v11 = vld [vmem:[%s5257_s5 + $0x380] sm:$0xff]   ;;  %v4259_v14 = vld [vmem:[%s5257_s5 + $0x308] sm:$0xff]  }
  0xbb   : > { %3717 = vmatprep.subr.bf16.mxu0 %v4209_v16  ;;  %3751 = vmatprep.subr.bf16.mxu1 %v4211_v24  ;;  %v4260_v16 = vld [vmem:[%s5256_s4 + $0x9c] ss:$60 sps:$4 sm:$0xff]  }
  0xbc   : > { %1987 = vmatprep.mubr.bf16.mxu0 %v4212_v25  ;;  %2044 = vmatprep.mubr.bf16.mxu1 %v4217_v35  ;;  %v4263_v24 = vld [vmem:[%s5256_s4 + $0x98] ss:$60 sps:$4 sm:$0xff]  }
  0xbd   : > { %v4264_v25 = vld [vmem:[%s5257_s5 + $0x350] sm:$0xff]  }
  0xbe   : > { %3718 = vmatpush3.bf16.msra.mxu0 %v4210_v17  ;;  %3752 = vmatpush3.bf16.msra.mxu1 %v4214_v26  ;;  %v4262_v17 = vld [vmem:[%s5257_s5 + $0x388] sm:$0xff]   ;;  %v4265_v26 = vld [vmem:[%s5256_s4 + $0xa4] ss:$60 sps:$4 sm:$0xff]   ;;  %v4269_v35 = vld [vmem:[%s5257_s5 + $0x390] sm:$0xff]  }
  0xbf   : > { %3719 = vmatprep.subr.bf16.mxu0 %v4216_v34  ;;  %3753 = vmatprep.subr.bf16.mxu1 %v4221_v41  ;;  %v4268_v34 = vld [vmem:[%s5256_s4 + $0xa0] ss:$60 sps:$4 sm:$0xff]   ;;  %v4272_v41 = vld [vmem:[%s5256_s4 + $0x114] ss:$60 sps:$4 sm:$0xff]  }
  0xc1   : > { %1988 = vmatmul.mubr.bf16.gmra.mrb[16].mxu0 %v4215_v27  ;;  %2045 = vmatmul.mubr.bf16.gmra.mrb[16].mxu1 %v4220_v40  ;;  %v4267_v27 = vld [vmem:[%s5257_s5 + $0x310] sm:$0xff]   ;;  %v4271_v40 = vld [vmem:[%s5257_s5 + $0x318] sm:$0xff]  }
  0xc2   : > { %3720 = vmatpush3.bf16.msra.mxu0 %v4219_v39  ;;  %3754 = vmatpush3.bf16.msra.mxu1 %v4222_v42  ;;  %v4270_v39 = vld [vmem:[%s5257_s5 + $0x358] sm:$0xff]  }
  0xc3   : > { %3721 = vmatprep.subr.bf16.mxu0 %v4223_v43  ;;  %3755 = vmatprep.subr.bf16.mxu1 %v4225_v45  ;;  %v4274_v42 = vld [vmem:[%s5257_s5 + $0x398] sm:$0xff]   ;;  %v4275_v43 = vld [vmem:[%s5256_s4 + $0x110] ss:$60 sps:$4 sm:$0xff]  }
  0xc4   : > { %1995 = vmatprep.mubr.bf16.mxu0 %v4226_v46  ;;  %2052 = vmatprep.mubr.bf16.mxu1 %v4231_v50  ;;  %v4277_v45 = vld [vmem:[%s5256_s4 + $0x11c] ss:$60 sps:$4 sm:$0xff]   ;;  %v4279_v46 = vld [vmem:[%s5257_s5 + $0x320] sm:$0xff]   ;;  %v4283_v50 = vld [vmem:[%s5257_s5 + $0x328] sm:$0xff]  }
  0xc6   : > { %3722 = vmatpush3.bf16.msra.mxu0 %v4224_v44  ;;  %3756 = vmatpush3.bf16.msra.mxu1 %v4228_v47  ;;  %v4276_v44 = vld [vmem:[%s5257_s5 + $0x360] sm:$0xff]   ;;  %v4280_v47 = vld [vmem:[%s5256_s4 + $0x118] ss:$60 sps:$4 sm:$0xff]  }
  0xc7   : > { %3723 = vmatprep.subr.bf16.mxu0 %v4230_v49  ;;  %3757 = vmatprep.subr.bf16.mxu1 %v4235_v53  ;;  %v4282_v49 = vld [vmem:[%s5257_s5 + $0x368] sm:$0xff]   ;;  %v4286_v53 = vld [vmem:[%s5257_s5 + $0x330] sm:$0xff]  }
  0xc9   : > { %1996 = vmatmul.mubr.bf16.gmra.mrb[20].mxu0 %v4229_v48  ;;  %2053 = vmatmul.mubr.bf16.gmra.mrb[20].mxu1 %v4234_v52  ;;  %v4281_v48 = vld [vmem:[%s5257_s5 + $0x3a0] sm:$0xff]   ;;  %v4285_v52 = vld [vmem:[%s5257_s5 + $0x370] sm:$0xff]  }
  0xca   : > { %3724 = vmatpush3.bf16.msra.mxu0 %v4233_v51  ;;  %3758 = vmatpush3.bf16.msra.mxu1 %v4236_v54  ;;  %v4284_v51 = vld [vmem:[%s5257_s5 + $0x3a8] sm:$0xff]   ;;  %v4287_v54 = vld [vmem:[%s5257_s5 + $0x3b0] sm:$0xff]  }
  0xcb   : > { %3725 = vmatprep.subr.bf16.mxu0 %v4237_v55  ;;  %3759 = vmatprep.subr.bf16.mxu1 %v4239_v57  ;;  %v4288_v55 = vld [vmem:[%s5257_s5 + $0x378] sm:$0xff]   ;;  %v4292_v57 = vld [vmem:[%s5256_s4 + $0x34] ss:$60 sps:$4 sm:$0xff]  }
  0xcc   : > { %2093 = vmatprep.mubr.bf16.mxu0 %v4250_v3  ;;  %2150 = vmatprep.mubr.bf16.mxu1 %v4255_v7  ;;  %v2315_v3 = vld [vmem:[%s5258_s6] sm:$0xff]  ;;  %v2318_v7 = vld [vmem:[%s5258_s6 + $0x18] sm:$0xff] }
  0xce   : > { %3726 = vmatpush3.bf16.msra.mxu0 %v4238_v56  ;;  %3760 = vmatpush3.bf16.msra.mxu1 %v4240_v58  ;;  %v4289_v56 = vld [vmem:[%s5257_s5 + $0x338] sm:$0xff]  }
  0xcf   : > { %3727 = vmatprep.subr.bf16.mxu0 %v4241_v59  ;;  %3761 = vmatprep.subr.bf16.mxu1 %v4243_v61  ;;  %v4293_v58 = vld [vmem:[%s5257_s5 + $0x3b8] sm:$0xff]   ;;  %v4290_v59 = vld [vmem:[%s5256_s4 + $0x30] ss:$60 sps:$4 sm:$0xff]  }
  0xd0   : > { %v4295_v61 = vld [vmem:[%s5256_s4 + $0xac] ss:$60 sps:$4 sm:$0xff]  }
  0xd2   : > { %3728 = vmatpush3.bf16.msra.mxu0 %v4242_v60  ;;  %3762 = vmatpush3.bf16.msra.mxu1 %v4244_v62  ;;  %v4294_v60 = vld [vmem:[%s5256_s4 + $0x38] ss:$60 sps:$4 sm:$0xff]   ;;  %v4297_v62 = vld [vmem:[%s5256_s4 + $0xa8] ss:$60 sps:$4 sm:$0xff]  }
  0xd3   : > { %3729 = vmatprep.subr.bf16.mxu0 %v4245_v63  ;;  %3763 = vmatprep.subr.bf16.mxu1 %v4247_v1  ;;  %v4298_v63 = vld [vmem:[%s5256_s4 + $0xb0] ss:$60 sps:$4 sm:$0xff]   ;;  %v4301_v1 = vld [vmem:[%s5256_s4 + $0x120] ss:$60 sps:$4 sm:$0xff]  }
  0xd6   : > { %3730 = vmatpush3.bf16.msra.mxu0 %v4246_v0  ;;  %3764 = vmatpush3.bf16.msra.mxu1 %v4251_v4  ;;  %v4299_v0 = vld [vmem:[%s5256_s4 + $0x124] ss:$60 sps:$4 sm:$0xff]   ;;  %v2316_v4 = vld [vmem:[%s5258_s6 + $0x8] sm:$0xff] }
  0xd7   : > { %3783 = vmatprep.subr.bf16.mxu0 %v4252_v5  ;;  %3885 = vmatprep.subr.bf16.mxu1 %v4336_v10  ;;  %v4037_v5 = vpack.c.bf16 %v2316_v4, %v2315_v3 }
  0xd9   : > { %2094 = vmatmul.mubr.bf16.vlgmr.msra.gmra.mrb[24].mxu0 %v4248_v2  ;;  %2151 = vmatmul.mubr.bf16.vlgmr.msra.gmra.mrb[24].mxu1 %v4253_v6  ;;  %v4302_v2 = vld [vmem:[%s5256_s4 + $0x128] ss:$60 sps:$4 sm:$0xff]   ;;  %v2317_v6 = vld [vmem:[%s5258_s6 + $0x10] sm:$0xff] }
  0xda   : > { %3784 = vmatpush3.bf16.msra.mxu0 %v4256_v8  ;;  %3886 = vmatpush3.bf16.msra.mxu1 %v4257_v11  ;;  %v4041_v8 = vpack.c.bf16 %v2318_v7, %v2317_v6 }
  0xdb   : > { %3785 = vmatprep.subr.bf16.mxu0 %v4258_v13  ;;  %3887 = vmatprep.subr.bf16.mxu1 %v4336_v10 }
  0xdc   : > { %2101 = vmatprep.mubr.bf16.mxu0 %v4260_v16  ;;  %2158 = vmatprep.mubr.bf16.mxu1 %v4265_v26 }
  0xde   : > { %3786 = vmatpush3.bf16.msra.mxu0 %v4259_v14  ;;  %3888 = vmatpush3.bf16.msra.mxu1 %v4262_v17 }
  0xdf   : > { %3787 = vmatprep.subr.bf16.mxu0 %v4264_v25  ;;  %3889 = vmatprep.subr.bf16.mxu1 %v4336_v10 }
  0xe1   : > { %2102 = vmatmul.mubr.bf16.gmra.mrb[28].mxu0 %v4263_v24  ;;  %2159 = vmatmul.mubr.bf16.gmra.mrb[28].mxu1 %v4268_v34 }
  0xe2   : > { %3788 = vmatpush3.bf16.msra.mxu0 %v4267_v27  ;;  %3890 = vmatpush3.bf16.msra.mxu1 %v4269_v35 }
  0xe3   : > { %3789 = vmatprep.subr.bf16.mxu0 %v4270_v39  ;;  %3891 = vmatprep.subr.bf16.mxu1 %v4336_v10 }
  0xe4   : > { %2109 = vmatprep.mubr.bf16.mxu0 %v4272_v41  ;;  %2166 = vmatprep.mubr.bf16.mxu1 %v4277_v45 }
  0xe6   : > { %3790 = vmatpush3.bf16.msra.mxu0 %v4271_v40  ;;  %3892 = vmatpush3.bf16.msra.mxu1 %v4274_v42 }
  0xe7   : > { %3791 = vmatprep.subr.bf16.mxu0 %v4276_v44  ;;  %3893 = vmatprep.subr.bf16.mxu1 %v4336_v10 }
  0xe9   : > { %2110 = vmatmul.mubr.bf16.gmra.mrb[32].mxu0 %v4275_v43  ;;  %2167 = vmatmul.mubr.bf16.gmra.mrb[32].mxu1 %v4280_v47 }
  0xea   : > { %3792 = vmatpush3.bf16.msra.mxu0 %v4279_v46  ;;  %3894 = vmatpush3.bf16.msra.mxu1 %v4281_v48 }
  0xeb   : > { %3901 = vmatprep.mubr.msk.bf16.mxu1 %vm4337_vm11, %v4336_v10  ;;  %3793 = vmatprep.subr.bf16.mxu0 %v4282_v49 }
  0xec   : > { %3895 = vmatprep.subr.bf16.mxu1 %v4336_v10  ;;  %2207 = vmatprep.mubr.bf16.mxu0 %v4292_v57 }
  0xee   : > { %3794 = vmatpush3.bf16.msra.mxu0 %v4283_v50  ;;  %3896 = vmatpush3.bf16.msra.mxu1 %v4284_v51 }
  0xef   : > { %3795 = vmatprep.subr.bf16.mxu0 %v4285_v52  ;;  %3897 = vmatprep.subr.bf16.mxu1 %v4336_v10 }
  0xf2   : > { %3796 = vmatpush3.bf16.msra.mxu0 %v4286_v53  ;;  %3898 = vmatpush3.bf16.msra.mxu1 %v4287_v54 }
  0xf3   : > { %3797 = vmatprep.subr.bf16.mxu0 %v4288_v55  ;;  %3899 = vmatprep.subr.bf16.mxu1 %v4336_v10 }
  0xf6   : > { %3798 = vmatpush3.bf16.msra.mxu0 %v4289_v56  ;;  %3900 = vmatpush3.bf16.msra.mxu1 %v4293_v58 }
  0xf7   : > { %4077 = vmatprep.subr.bf16.mxu1 %v4037_v5  ;;  %4038 = vmatprep.subr.bf16.mxu0 %v4037_v5 }
  0xf9   : > { %2208 = vmatmul.mubr.bf16.vlgmr.msra.gmra.mrb[36].mxu0 %v4290_v59  ;;  %3902 = vmatmul.mubr.bf16.vlgmr.msra.gmra.mrb[36].mxu1 %v4294_v60 }
  0xfa   : > { %2215 = vmatprep.mubr.bf16.mxu0 %v4295_v61  ;;  %3905 = vmatprep.mubr.msk.bf16.mxu1 %vm4337_vm11, %v4336_v10 }
  0xfb   : > { %4079 = vmatpush3.bf16.msra.mxu1 %v4037_v5  ;;  %4040 = vmatpush3.bf16.msra.mxu0 %v4037_v5 }
  0xfc   : > { %4042 = vmatprep.subr.bf16.mxu0 %v4041_v8  ;;  %4078 = vmatprep.subr.bf16.mxu1 %v4041_v8 }
  0xff   : > { %4044 = vmatpush3.bf16.msra.mxu0 %v4041_v8  ;;  %4080 = vmatpush3.bf16.msra.mxu1 %v4041_v8 }
 0x101   : > { %2216 = vmatmul.mubr.bf16.gmra.mrb[40].mxu0 %v4297_v62  ;;  %3906 = vmatmul.mubr.bf16.gmra.mrb[40].mxu1 %v4298_v63 }
 0x102   : > { %2223 = vmatprep.mubr.bf16.mxu0 %v4299_v0  ;;  %3909 = vmatprep.mubr.msk.bf16.mxu1 %vm4337_vm11, %v4336_v10 }
 0x109   : > { %2224 = vmatmul.mubr.bf16.gmra.mrb[44].mxu0 %v4301_v1  ;;  %3910 = vmatmul.mubr.bf16.gmra.mrb[44].mxu1 %v4302_v2 }
 0x10f   : > { %v3595_v10 = vpop.f32.mrb[0].mxu0 }
 0x110   : > { %v3629_v11 = vpop.f32.mrb[0].mxu1  ;;  %v3596_v13 = vpop.f32.mrb[1].mxu0 }
 0x111   : > { %v3597_v14 = vadd.f32 %v3596_v13, %v3595_v10  ;;  %v3630_v16 = vpop.f32.mrb[1].mxu1  ;;  %v3598_v17 = vpop.f32.mrb[2].mxu0 }
 0x112   : > { %v3631_v24 = vadd.f32 %v3630_v16, %v3629_v11  ;;  %v3632_v25 = vpop.f32.mrb[2].mxu1  ;;  %v3599_v26 = vpop.f32.mrb[3].mxu0 }
 0x113   : > { %v3600_v27 = vadd.f32 %v3599_v26, %v3598_v17  ;;  %v3633_v34 = vpop.f32.mrb[3].mxu1 }
 0x114   : > { %v1925_v35 = vadd.f32 %v3631_v24, %v3597_v14  ;;  %v3634_v39 = vadd.f32 %v3633_v34, %v3632_v25 }
 0x116   : > { %v1928_v40 = vadd.f32 %v3634_v39, %v3600_v27 }
 0x117   : > { %v3601_v41 = vpop.f32.mrb[4].mxu0 }
 0x118   : > { %v3635_v42 = vpop.f32.mrb[4].mxu1  ;;  %v3602_v43 = vpop.f32.mrb[5].mxu0 }
 0x119   : > { %v3636_v44 = vpop.f32.mrb[5].mxu1  ;;  %v3603_v45 = vadd.f32 %v3602_v43, %v3601_v41  ;;  %v3604_v47 = vpop.f32.mrb[6].mxu0 }
 0x11a   : > { %v3637_v46 = vadd.f32 %v3636_v44, %v3635_v42  ;;  %v3638_v48 = vpop.f32.mrb[6].mxu1  ;;  %v3605_v49 = vpop.f32.mrb[7].mxu0 }
 0x11b   : > { %v3639_v50 = vpop.f32.mrb[7].mxu1  ;;  %v3606_v52 = vadd.f32 %v3605_v49, %v3604_v47 }
 0x11c   : > { %v1933_v51 = vadd.f32 %v3637_v46, %v3603_v45  ;;  %v3640_v53 = vadd.f32 %v3639_v50, %v3638_v48 }
 0x11e   : > { %v1936_v54 = vadd.f32 %v3640_v53, %v3606_v52 }
 0x11f   : > { %v3607_v56 = vpop.f32.mrb[8].mxu0 }
 0x120   : > { %v3641_v55 = vpop.f32.mrb[8].mxu1  ;;  %v3608_v58 = vpop.f32.mrb[9].mxu0 }
 0x121   : > { %v3642_v57 = vpop.f32.mrb[9].mxu1  ;;  %v3609_v61 = vadd.f32 %v3608_v58, %v3607_v56  ;;  %v3610_v62 = vpop.f32.mrb[10].mxu0 }
 0x122   : > { %v3643_v59 = vadd.f32 %v3642_v57, %v3641_v55  ;;  %v3644_v60 = vpop.f32.mrb[10].mxu1  ;;  %v3611_v0 = vpop.f32.mrb[11].mxu0 }
 0x123   : > { %v3645_v63 = vpop.f32.mrb[11].mxu1  ;;  %v3612_v3 = vadd.f32 %v3611_v0, %v3610_v62 }
 0x124   : > { %v3646_v1 = vadd.f32 %v3645_v63, %v3644_v60  ;;  %v1941_v2 = vadd.f32 %v3643_v59, %v3609_v61 }
 0x126   : > { %v1944_v4 = vadd.f32 %v3646_v1, %v3612_v3 }
 0x18c   : > { %v3663_v5 = vpop.f32.mrb[12].mxu0  ;;  %v3697_v10 = vpop.f32.mrb[12].mxu1 }
 0x18d   : > { %v3664_v6 = vpop.f32.mrb[13].mxu0  ;;  %v3698_v16 = vpop.f32.mrb[13].mxu1 }
 0x18e   : > { %v3665_v7 = vadd.f32 %v3664_v6, %v3663_v5  ;;  %v3666_v8 = vpop.f32.mrb[14].mxu0  ;;  %v3699_v17 = vadd.f32 %v3698_v16, %v3697_v10  ;;  %v3700_v24 = vpop.f32.mrb[14].mxu1 }
 0x18f   : > { %v3667_v11 = vpop.f32.mrb[15].mxu0  ;;  %v3701_v26 = vpop.f32.mrb[15].mxu1 }
 0x190   : > { %v1982_v13 = vadd.f32 %v3665_v7, %v1925_v35  ;;  %v3668_v14 = vadd.f32 %v3667_v11, %v3666_v8  ;;  %v3702_v34 = vadd.f32 %v3701_v26, %v3700_v24 }
 0x192   : > { %v1985_v25 = vadd.f32 %v3668_v14, %v1928_v40  ;;  %v2039_v27 = vadd.f32 %v3699_v17, %v1982_v13 }
 0x194   : > { %v2042_v39 = vadd.f32 %v3702_v34, %v1985_v25  ;;  %v3669_v41 = vpop.f32.mrb[16].mxu0  ;;  %v3703_v47 = vpop.f32.mrb[16].mxu1 }
 0x195   : > { %v3670_v42 = vpop.f32.mrb[17].mxu0  ;;  %v3704_v49 = vpop.f32.mrb[17].mxu1 }
 0x196   : > { %v3671_v43 = vadd.f32 %v3670_v42, %v3669_v41  ;;  %v3672_v44 = vpop.f32.mrb[18].mxu0  ;;  %v3705_v35 = vadd.f32 %v3704_v49, %v3703_v47  ;;  %v3706_v52 = vpop.f32.mrb[18].mxu1 }
 0x197   : > { %v3673_v45 = vpop.f32.mrb[19].mxu0  ;;  %v3707_v53 = vpop.f32.mrb[19].mxu1 }
 0x198   : > { %v1990_v46 = vadd.f32 %v3671_v43, %v1933_v51  ;;  %v3674_v48 = vadd.f32 %v3673_v45, %v3672_v44  ;;  %v3708_v56 = vadd.f32 %v3707_v53, %v3706_v52 }
 0x19a   : > { %v1993_v50 = vadd.f32 %v3674_v48, %v1936_v54  ;;  %v2047_v55 = vadd.f32 %v3705_v35, %v1990_v46 }
 0x19c   : > { %v2050_v40 = vadd.f32 %v3708_v56, %v1993_v50  ;;  %v3675_v57 = vpop.f32.mrb[20].mxu0  ;;  %v3709_v61 = vpop.f32.mrb[20].mxu1 }
 0x19d   : > { %v3676_v58 = vpop.f32.mrb[21].mxu0  ;;  %v3710_v1 = vpop.f32.mrb[21].mxu1 }
 0x19e   : > { %v3677_v59 = vadd.f32 %v3676_v58, %v3675_v57  ;;  %v3678_v60 = vpop.f32.mrb[22].mxu0  ;;  %v3711_v51 = vadd.f32 %v3710_v1, %v3709_v61  ;;  %v3712_v3 = vpop.f32.mrb[22].mxu1 }
 0x19f   : > { %v3679_v62 = vpop.f32.mrb[23].mxu0  ;;  %v3713_v6 = vpop.f32.mrb[23].mxu1 }
 0x1a0   : > { %v1998_v63 = vadd.f32 %v3677_v59, %v1941_v2  ;;  %v3680_v0 = vadd.f32 %v3679_v62, %v3678_v60  ;;  %v3714_v7 = vadd.f32 %v3713_v6, %v3712_v3 }
 0x1a2   : > { %v2001_v5 = vadd.f32 %v3680_v0, %v1944_v4  ;;  %v2055_v54 = vadd.f32 %v3711_v51, %v1998_v63 }
 0x1a4   : > { %v2058_v8 = vadd.f32 %v3714_v7, %v2001_v5 }
 0x1ac   : > { %v3731_v10 = vpop.f32.mrb[24].mxu0  ;;  %v3765_v16 = vpop.f32.mrb[24].mxu1 }
 0x1ad   : > { %v3732_v11 = vpop.f32.mrb[25].mxu0  ;;  %v3766_v26 = vpop.f32.mrb[25].mxu1 }
 0x1ae   : > { %v3733_v13 = vadd.f32 %v3732_v11, %v3731_v10  ;;  %v3734_v14 = vpop.f32.mrb[26].mxu0  ;;  %v3767_v34 = vadd.f32 %v3766_v26, %v3765_v16  ;;  %v3768_v2 = vpop.f32.mrb[26].mxu1 }
 0x1af   : > { %v3735_v17 = vpop.f32.mrb[27].mxu0  ;;  %v3769_v42 = vpop.f32.mrb[27].mxu1 }
 0x1b0   : > { %v2096_v24 = vadd.f32 %v3733_v13, %v2039_v27  ;;  %v3736_v25 = vadd.f32 %v3735_v17, %v3734_v14  ;;  %v3770_v44 = vadd.f32 %v3769_v42, %v3768_v2  ;;  %v2291_v17 = vsub.s32 0, %v4471_v12 }
 0x1b2   : > { %v2099_v41 = vadd.f32 %v3736_v25, %v2042_v39  ;;  %v2153_v43 = vadd.f32 %v3767_v34, %v2096_v24 }
 0x1b4   : > { %v3737_v4 = vpop.f32.mrb[28].mxu0  ;;  %v2156_v45 = vadd.f32 %v3770_v44, %v2099_v41  ;;  %v3771_v35 = vpop.f32.mrb[28].mxu1  ;;  %v2301_v41 = vsub.s32 1, %v4471_v12 }
 0x1b5   : > { %v3738_v46 = vpop.f32.mrb[29].mxu0  ;;  %v3772_v53 = vpop.f32.mrb[29].mxu1 }
 0x1b6   : > { %v3739_v47 = vadd.f32 %v3738_v46, %v3737_v4  ;;  %v3740_v48 = vpop.f32.mrb[30].mxu0  ;;  %v3773_v27 = vadd.f32 %v3772_v53, %v3771_v35  ;;  %v3774_v57 = vpop.f32.mrb[30].mxu1  ;;  %v2292_v4 = vrot.slane %v4498_v22, %v2291_v17 }
 0x1b7   : > { %v3741_v49 = vpop.f32.mrb[31].mxu0  ;;  %v3775_v58 = vpop.f32.mrb[31].mxu1 }
 0x1b8   : > { %v2104_v50 = vadd.f32 %v3739_v47, %v2047_v55  ;;  %v3742_v52 = vadd.f32 %v3741_v49, %v3740_v48  ;;  %v3776_v60 = vadd.f32 %v3775_v58, %v3774_v57  ;;  %v2302_v49 = vrot.slane %v4498_v22, %v2301_v41 }
 0x1ba   : > { %v2107_v56 = vadd.f32 %v3742_v52, %v2050_v40  ;;  %v2161_v59 = vadd.f32 %v3773_v27, %v2104_v50 }
 0x1bc   : > { %v3743_v39 = vpop.f32.mrb[32].mxu0  ;;  %v2164_v61 = vadd.f32 %v3776_v60, %v2107_v56  ;;  %v3777_v1 = vpop.f32.mrb[32].mxu1 }
 0x1bd   : > { %v3744_v62 = vpop.f32.mrb[33].mxu0  ;;  %v3778_v6 = vpop.f32.mrb[33].mxu1 }
 0x1be   : > { %v3745_v63 = vadd.f32 %v3744_v62, %v3743_v39  ;;  %v3746_v0 = vpop.f32.mrb[34].mxu0  ;;  %v3779_v55 = vadd.f32 %v3778_v6, %v3777_v1  ;;  %v3780_v7 = vpop.f32.mrb[34].mxu1 }
 0x1bf   : > { %v3747_v51 = vpop.f32.mrb[35].mxu0  ;;  %v3781_v11 = vpop.f32.mrb[35].mxu1 }
 0x1c0   : > { %v2112_v3 = vadd.f32 %v3745_v63, %v2055_v54  ;;  %v3748_v5 = vadd.f32 %v3747_v51, %v3746_v0  ;;  %v3782_v13 = vadd.f32 %v3781_v11, %v3780_v7 }
 0x1c2   : > { %v2115_v10 = vadd.f32 %v3748_v5, %v2058_v8  ;;  %v2169_v40 = vadd.f32 %v3779_v55, %v2112_v3 }
 0x1c4   : > { %v2172_v14 = vadd.f32 %v3782_v13, %v2115_v10 }
 0x1cc   : > { %v3799_v16 = vpop.f32.mrb[36].mxu0  ;;  %v2266_v25 = vpop.f32.mrb[36].mxu1 }
 0x1cd   : > { %v3800_v24 = vpop.f32.mrb[37].mxu0  ;;  %v3903_v2 = vpop.f32.mrb[37].mxu1 }
 0x1ce   : > { %v3801_v26 = vadd.f32 %v3800_v24, %v3799_v16  ;;  %v3802_v34 = vpop.f32.mrb[38].mxu0  ;;  %v2269_v42 = vpop.f32.mrb[38].mxu1 }
 0x1cf   : > { %v3803_v54 = vpop.f32.mrb[39].mxu0  ;;  %v3904_v46 = vpop.f32.mrb[39].mxu1 }
 0x1d0   : > { %v2210_v44 = vadd.f32 %v3801_v26, %v2153_v43  ;;  %v3804_v8 = vadd.f32 %v3803_v54, %v3802_v34 }
 0x1d2   : > { %v2267_v47 = vadd.f32 %v2266_v25, %v2210_v44  ;;  %v2213_v48 = vadd.f32 %v3804_v8, %v2156_v45 }
 0x1d4   : > { %v2293_v50 = vmul.f32 %v2292_v4, %v2267_v47  ;;  %v2270_v35 = vadd.f32 %v2269_v42, %v2213_v48  ;;  %v3805_v52 = vpop.f32.mrb[40].mxu0  ;;  %v2274_v56 = vpop.f32.mrb[40].mxu1 }
 0x1d5   : > { %v3806_v53 = vpop.f32.mrb[41].mxu0  ;;  %v3907_v60 = vpop.f32.mrb[41].mxu1 }
 0x1d6   : > { %v2294_v27 = vmul.f32 %v2292_v4, %v2270_v35  ;;  %v3807_v57 = vadd.f32 %v3806_v53, %v3805_v52  ;;  %v3808_v58 = vpop.f32.mrb[42].mxu0  ;;  %v2303_v39 = vadd.f32 %v2302_v49, %v2293_v50  ;;  %v2277_v43 = vpop.f32.mrb[42].mxu1 }
 0x1d7   : > { %v3809_v62 = vpop.f32.mrb[43].mxu0  ;;  %v3908_v51 = vpop.f32.mrb[43].mxu1 }
 0x1d8   : > { %v2304_v63 = vadd.f32 %v2302_v49, %v2294_v27  ;;  %v2218_v0 = vadd.f32 %v3807_v57, %v2161_v59  ;;  %v3810_v1 = vadd.f32 %v3809_v62, %v3808_v58  ;;  %v2309_v3 = vmax.f32 %v2303_v39, 0.0 }
 0x1d9   : > { %v2439_v27 = vsub.s32 3, %v4471_v12  ;;  %v2449_v57 = vsub.s32 4, %v4471_v12 }
 0x1da   : > { %v2310_v45 = vmax.f32 %v2304_v63, 0.0  ;;  %v2275_v5 = vadd.f32 %v2274_v56, %v2218_v0  ;;  %v2221_v6 = vadd.f32 %v3810_v1, %v2164_v61  ;;  %3921 = vmatprep.mubr.msk.f32.mxu0 %vm521_vm1, %v2309_v3 }
 0x1db   : > { %v2440_v58 = vrot.slane %v4498_v22, %v2439_v27  ;;  %v2450_v39 = vrot.slane %v4498_v22, %v2449_v57 }
 0x1dc   : > { %v2295_v55 = vmul.f32 %v2292_v4, %v2275_v5  ;;  %v2278_v7 = vadd.f32 %v2277_v43, %v2221_v6  ;;  %v3811_v10 = vpop.f32.mrb[44].mxu0  ;;  %3922 = vmatmul.mubr.msk.f32.vlgmr.msra.gmra.mrb[48].mxu0 %vm521_vm1, %v2310_v45  ;;  %v2282_v13 = vpop.f32.mrb[44].mxu1 }
 0x1dd   : > { %v3812_v11 = vpop.f32.mrb[45].mxu0  ;;  %v3911_v25 = vpop.f32.mrb[45].mxu1 }
 0x1de   : > { %v2296_v16 = vmul.f32 %v2292_v4, %v2278_v7  ;;  %v3813_v17 = vadd.f32 %v3812_v11, %v3811_v10  ;;  %v3814_v24 = vpop.f32.mrb[46].mxu0  ;;  %v2305_v59 = vadd.f32 %v2302_v49, %v2295_v55  ;;  %v2285_v34 = vpop.f32.mrb[46].mxu1 }
 0x1df   : > { %v3815_v26 = vpop.f32.mrb[47].mxu0  ;;  %v3912_v61 = vpop.f32.mrb[47].mxu1 }
 0x1e0   : > { %v2306_v2 = vadd.f32 %v2302_v49, %v2296_v16  ;;  %v2226_v41 = vadd.f32 %v3813_v17, %v2169_v40  ;;  %v3816_v54 = vadd.f32 %v3815_v26, %v3814_v24  ;;  %v2311_v42 = vmax.f32 %v2305_v59, 0.0 }
 0x1e1   : > { %v2321_v40 = vsub.s32 2, %v4471_v12 }
 0x1e2   : > { %v2312_v44 = vmax.f32 %v2306_v2, 0.0  ;;  %v2283_v8 = vadd.f32 %v2282_v13, %v2226_v41  ;;  %v2229_v46 = vadd.f32 %v3816_v54, %v2172_v14  ;;  %3924 = vmatprep.mubr.msk.f32.mxu1 %vm521_vm1, %v2311_v42 }
 0x1e3   : > { %v2322_v14 = vrot.slane %v4498_v22, %v2321_v40 }
 0x1e4   : > { %v2297_v47 = vmul.f32 %v2292_v4, %v2283_v8  ;;  %v2286_v48 = vadd.f32 %v2285_v34, %v2229_v46  ;;  %3925 = vmatmul.mubr.msk.f32.vlgmr.msra.gmra.mrb[48].mxu1 %vm521_vm1, %v2312_v44 }
 0x1e6   : > { %v2298_v50 = vmul.f32 %v2292_v4, %v2286_v48  ;;  %v2307_v35 = vadd.f32 %v2302_v49, %v2297_v47 }
 0x1e8   : > { %v2313_v52 = vmax.f32 %v2307_v35, 0.0  ;;  %v2308_v53 = vadd.f32 %v2302_v49, %v2298_v50 }
 0x1ea   : > { %3927 = vmatprep.mubr.msk.f32.mxu1 %vm521_vm1, %v2313_v52  ;;  %v2314_v56 = vmax.f32 %v2308_v53, 0.0 }
 0x1ec   : > { %3928 = vmatmul.mubr.msk.f32.gmra.mrb[50].mxu1 %vm521_vm1, %v2314_v56 }
 0x2af   : > { %v3923_v60 = vpop.f32.mrb[48].mxu0 }
 0x2b0   : > { %v2414_v4 = vadd.f32 %v3923_v60, %v2322_v14  ;;  %v2408_v49 = vpop.f32.mrb[49].mxu0 }
 0x2b1   : > { %v2409_v62 = vadd.f32 %v2408_v49, %v2322_v14 }
 0x2b2   : > { %v2442_v43 = vmul.f32 %v2440_v58, %v2414_v4 }
 0x2b3   : > { %v2441_v63 = vmul.f32 %v2440_v58, %v2409_v62 }
 0x2b4   : > { %v2452_v0 = vadd.f32 %v2450_v39, %v2442_v43 }
 0x2b5   : > { %v2451_v1 = vadd.f32 %v2450_v39, %v2441_v63 }
 0x2b6   : > { %v2458_v51 = vmax.f32 %v2452_v0, 0.0 }
 0x2b7   : > { %v2457_v3 = vmax.f32 %v2451_v1, 0.0  ;;  %v3926_v45 = vpop.f32.mrb[48].mxu1 }
 0x2b8   : > { %2465 = vst.msk [vmem:[#allocation4 + $0x8] sm:$0xff] %vm521_vm1, %v2458_v51  ;;  %v2424_v5 = vadd.f32 %v3926_v45, %v2322_v14  ;;  %v2418_v6 = vpop.f32.mrb[49].mxu1 }
 0x2b9   : > { %2464 = vst.msk [vmem:[#allocation4] sm:$0xff] %vm521_vm1, %v2457_v3  ;;  %v2419_v55 = vadd.f32 %v2418_v6, %v2322_v14 }
 0x2ba   : > { %v2444_v7 = vmul.f32 %v2440_v58, %v2424_v5 }
 0x2bb   : > { %v2443_v10 = vmul.f32 %v2440_v58, %v2419_v55 }
 0x2bc   : > { %v2454_v11 = vadd.f32 %v2450_v39, %v2444_v7 }
 0x2bd   : > { %v2453_v13 = vadd.f32 %v2450_v39, %v2443_v10 }
 0x2be   : > { %v2460_v16 = vmax.f32 %v2454_v11, 0.0 }
 0x2bf   : > { %v2459_v17 = vmax.f32 %v2453_v13, 0.0  ;;  %v3929_v24 = vpop.f32.mrb[50].mxu1 }
 0x2c0   : > { %2467 = vst.msk [vmem:[#allocation4 + $0x18] sm:$0xff] %vm521_vm1, %v2460_v16  ;;  %v2434_v25 = vadd.f32 %v3929_v24, %v2322_v14  ;;  %v2428_v59 = vpop.f32.mrb[51].mxu1 }
 0x2c1   : > { %2466 = vst.msk [vmem:[#allocation4 + $0x10] sm:$0xff] %vm521_vm1, %v2459_v17  ;;  %v2429_v26 = vadd.f32 %v2428_v59, %v2322_v14 }
 0x2c2   : > { %v2446_v34 = vmul.f32 %v2440_v58, %v2434_v25 }
 0x2c3   : > { %v2445_v2 = vmul.f32 %v2440_v58, %v2429_v26 }
 0x2c4   : > { %v2456_v41 = vadd.f32 %v2450_v39, %v2446_v34 }
 0x2c5   : > { %v2455_v54 = vadd.f32 %v2450_v39, %v2445_v2 }
 0x2c6   : > { %v2462_v61 = vmax.f32 %v2456_v41, 0.0 }
 0x2c7   : > { %v2461_v42 = vmax.f32 %v2455_v54, 0.0 }
 0x2c8   : > { %2469 = vst.msk [vmem:[#allocation4 + $0x28] sm:$0xff] %vm521_vm1, %v2462_v61 }
 0x2c9   : > { %2468 = vst.msk [vmem:[#allocation4 + $0x20] sm:$0xff] %vm521_vm1, %v2461_v42 }
 0x2ca PF: > { %3947 = vmatprep.subr.bf16.mxu1 %v4335_v9  ;;  %v2470_v44 = vld [vmem:[%s4434_s30] sm:$0xff]  ;;  %v2471_v8 = vld [vmem:[%s4434_s30 + $0x8] sm:$0xff]  ;;  %v2472_v50 = vld [vmem:[%s4434_s30 + $0x10] sm:$0xff]  ;;  %vm4338_vm12 = vmmov 0   ;;  %vm2627_vm13 = vcmask 1043456   ;;  %vm2617_vm14 = vcmask 195584  }
 0x2cb   : > { %v5079_v46 = vld [vmem:[#allocation2] sm:$0xff]  ;;  %v4045_v47 = vpack.c.bf16 %v2471_v8, %v2470_v44  ;;  %v5081_v48 = vld [vmem:[#allocation2 + $0x8] sm:$0xff]  ;;  %v2473_v35 = vld [vmem:[%s4434_s30 + $0x18] sm:$0xff]  ;;  %3951 = vmatprep.mubr.msk.bf16.mxu1 %vm4338_vm12, %v4335_v9  ;;  %vm2700_vm15 = vcmask 392192   ;;  %v2496_v28 = vsub.s32 0, %v4471_v12  ;;  %p3143_p7 = scmp.eq.s32.totalorder %s4323_s21, 2 }
 0x2cc   : > { %v2615_v52 = vpack.c.bf16 %v5081_v48, %v5079_v46  ;;  %v4049_v53 = vpack.c.bf16 %v2473_v35, %v2472_v50  ;;  %v5089_v56 = vld [vmem:[#allocation2 + $0x10] sm:$0xff]  ;;  %v2489_v57 = vld [vmem:[#allocation4 + $0x8] sm:$0xff]  ;;  %v2490_v58 = vld [vmem:[#allocation4 + $0x10] sm:$0xff]  ;;  %vm4341_vm2 = vmmov (%p3143_p7), 0   ;;  %vm3249_vm3 = vcmp.lt.s32.totalorder (%p3143_p7), %v4500_v23, 4 }
 0x2cd   : > { %v2488_v40 = vld [vmem:[#allocation4] sm:$0xff]  ;;  %4046 = vmatprep.subr.bf16.mxu0 %v4045_v47  ;;  %v2616_v27 = vpack.c.bf16 %v5089_v56, %v5089_v56  ;;  %v2491_v60 = vld [vmem:[#allocation4 + $0x18] sm:$0xff]  ;;  %v5125_v29 = vld [vmem:[%s4439_s15] sm:$0xff] }
 0x2ce   : > { %3938 = vmatprep.mubr.msk.f32.mxu0 %vm521_vm1, %v2488_v40  ;;  %3948 = vmatpush3.bf16.msra.mxu1 %v2615_v52  ;;  %v2497_v30 = vrot.slane %v5125_v29, %v2496_v28  ;;  %v2475_v50 = vld [vmem:[%s4434_s30 + $0x28] sm:$0xff]  ;;  %v4339_v52 = vmov 0.0|0.0   ;;  %v2477_v40 = vld [vmem:[%s4434_s30 + $0x38] sm:$0xff]  ;;  %v2478_v19 = vld [vmem:[%s4434_s30 + $0x40] sm:$0xff] }
 0x2cf   : > { %4048 = vmatpush3.bf16.msra.mxu0 %v4045_v47  ;;  %3949 = vmatprep.subr.bf16.mxu1 %v4335_v9  ;;  %v2629_v14 = vsel %vm2627_vm13, %v2616_v27, 0  ;;  %v2493_v39 = vld [vmem:[#allocation4 + $0x28] sm:$0xff]  ;;  %v2474_v47 = vld [vmem:[%s4434_s30 + $0x20] sm:$0xff] }
 0x2d0   : > { %4050 = vmatprep.subr.bf16.mxu0 %v4049_v53  ;;  %v2492_v4 = vld [vmem:[#allocation4 + $0x20] sm:$0xff]  ;;  %v4054_v35 = vpack.c.bf16 %v2475_v50, %v2474_v47 }
 0x2d2   : > { %3950 = vmatpush3.bf16.msra.mxu1 %v2629_v14 }
 0x2d3   : > { %4052 = vmatpush3.bf16.msra.mxu0 %v4049_v53  ;;  %v2476_v53 = vld [vmem:[%s4434_s30 + $0x30] sm:$0xff]  ;;  %4059 = vmatprep.subr.bf16.mxu1 %v4339_v52 }
 0x2d4   : > { %v4057_v27 = vpack.c.bf16 %v2477_v40, %v2476_v53  ;;  %v2483_v53 = vld [vmem:[%s4434_s30 + $0x68] sm:$0xff] }
 0x2d5   : > { %3952 = vmatmul.mubr.msk.bf16.vlgmr.msra.gmra.mrb[0].mxu1 %vm2617_vm14, %v569_v33 }
 0x2d6   : > { %3939 = vmatmul.mubr.msk.f32.vlgmr.msra.gmra.mrb[0].mxu0 %vm521_vm1, %v2489_v57  ;;  %3955 = vmatprep.mubr.msk.bf16.mxu1 %vm4338_vm12, %v4335_v9  ;;  %v2699_v57 = vld [vmem:[#allocation3 + $0x10] sm:$0xff] }
 0x2d7   : > { %3941 = vmatprep.mubr.msk.f32.mxu0 %vm521_vm1, %v2490_v58  ;;  %v2697_v58 = vld [vmem:[#allocation3] sm:$0xff] }
 0x2da   : > { %3942 = vmatmul.mubr.msk.f32.gmra.mrb[2].mxu0 %vm521_vm1, %v2491_v60 }
 0x2db   : > { %3944 = vmatprep.mubr.msk.f32.mxu0 %vm521_vm1, %v2492_v4  ;;  %v2772_v4 = vsub.s32 7, %v4471_v12 }
 0x2dd   : > { %3956 = vmatmul.mubr.msk.bf16.gmra.mrb[4].mxu1 %vm2617_vm14, %v570_v32 }
 0x2de   : > { %3945 = vmatmul.mubr.msk.f32.gmra.mrb[4].mxu0 %vm521_vm1, %v2493_v39  ;;  %3959 = vmatprep.mubr.msk.bf16.mxu1 %vm4338_vm12, %v4335_v9 }
 0x2df   : > { %3969 = vmatprep.mubr.msk.bf16.mxu0 %vm2700_vm15, %v590_v20 }
 0x2e5   : > { %3960 = vmatmul.mubr.msk.bf16.gmra.mrb[8].mxu1 %vm2617_vm14, %v571_v38 }
 0x2e6   : > { %3998 = vmatprep.mubr.msk.f32.mxu1 %vm4338_vm12, %v4335_v9 }
 0x3a8   : > { %v2665_v31 = vpop.f32.mrb[0].mxu1 }
 0x3a9   : > { %v3940_v32 = vpop.f32.mrb[0].mxu0  ;;  %v3953_v36 = vpop.f32.mrb[1].mxu1 }
 0x3aa   : > { %v2589_v33 = vadd.f32 %v3940_v32, %v2497_v30  ;;  %v2583_v37 = vpop.f32.mrb[1].mxu0  ;;  %v2668_v49 = vpop.f32.mrb[2].mxu1 }
 0x3ab   : > { %v2584_v38 = vadd.f32 %v2583_v37, %v2497_v30  ;;  %v3954_v43 = vpop.f32.mrb[3].mxu1  ;;  %v2773_v37 = vrot.slane %v5125_v29, %v2772_v4 }
 0x3ac   : > { %v2669_v62 = vadd.f32 %v2668_v49, %v2589_v33 }
 0x3ad   : > { %v2666_v63 = vadd.f32 %v2665_v31, %v2584_v38  ;;  %v3943_v0 = vpop.f32.mrb[2].mxu0  ;;  %v2774_v38 = vmul.f32 %v2773_v37, %v5079_v46  ;;  %v2775_v43 = vmul.f32 %v2773_v37, %v5081_v48  ;;  %v2480_v48 = vld [vmem:[%s4434_s30 + $0x50] sm:$0xff] }
 0x3ae   : > { %v2689_v15 = vmax.f32 %v2669_v62, 0.0  ;;  %v2593_v18 = vpop.f32.mrb[3].mxu0  ;;  %v2599_v51 = vadd.f32 %v3943_v0, %v2497_v30 }
 0x3af   : > { %v2688_v20 = vmax.f32 %v2666_v63, 0.0  ;;  %v2594_v1 = vadd.f32 %v2593_v18, %v2497_v30 }
 0x3b0   : > { %v2673_v45 = vpop.f32.mrb[4].mxu1 }
 0x3b1   : > { %v2694_v3 = vpack.c.bf16 %v2689_v15, %v2688_v20  ;;  %v3946_v5 = vpop.f32.mrb[4].mxu0  ;;  %v2674_v6 = vadd.f32 %v2673_v45, %v2594_v1  ;;  %v3957_v55 = vpop.f32.mrb[5].mxu1  ;;  %v2776_v15 = vmul.f32 %v2773_v37, %v5089_v56  ;;  %v2481_v20 = vld [vmem:[%s4434_s30 + $0x58] sm:$0xff]  ;;  %v2782_v56 = vsub.s32 1, %v4471_v12 }
 0x3b2   : > { %v2603_v7 = vpop.f32.mrb[5].mxu0  ;;  %v2676_v10 = vpop.f32.mrb[6].mxu1  ;;  %v2609_v59 = vadd.f32 %v3946_v5, %v2497_v30  ;;  %v4063_v1 = vpack.c.bf16 %v2481_v20, %v2480_v48  ;;  %v2882_v45 = vsub.s32 3, %v4471_v12 }
 0x3b3   : > { %3963 = vmatprep.subr.bf16.mxu0 %v2694_v3  ;;  %v2677_v11 = vadd.f32 %v2676_v10, %v2599_v51  ;;  %v3958_v13 = vpop.f32.mrb[7].mxu1  ;;  %v2690_v16 = vmax.f32 %v2674_v6, 0.0  ;;  %v2604_v24 = vadd.f32 %v2603_v7, %v2497_v30  ;;  %v2698_v30 = vld [vmem:[#allocation3 + $0x8] sm:$0xff]  ;;  %v2875_v51 = vsub.s32 2, %v4471_v12 }
 0x3b4   : > { %3964 = vmatpush3.bf16.msra.mxu0 %v2694_v3  ;;  %v2783_v3 = vrot.slane %v5125_v29, %v2782_v56  ;;  %v2883_v7 = vrot.slane %v5125_v29, %v2882_v45  ;;  %v2485_v56 = vld [vmem:[%s4434_s30 + $0x78] sm:$0xff] }
 0x3b5   : > { %v2691_v17 = vmax.f32 %v2677_v11, 0.0  ;;  %v2876_v5 = vrot.slane %v5125_v29, %v2875_v51 }
 0x3b7   : > { %v2695_v25 = vpack.c.bf16 %v2691_v17, %v2690_v16 }
 0x3b8   : > { %v2681_v26 = vpop.f32.mrb[8].mxu1 }
 0x3b9   : > { %v2682_v34 = vadd.f32 %v2681_v26, %v2604_v24  ;;  %v3961_v2 = vpop.f32.mrb[9].mxu1  ;;  %3965 = vmatprep.subr.bf16.mxu0 %v2695_v25 }
 0x3ba   : > { %v2684_v41 = vpop.f32.mrb[10].mxu1  ;;  %3966 = vmatpush3.bf16.msra.mxu0 %v2695_v25 }
 0x3bb   : > { %v2685_v54 = vadd.f32 %v2684_v41, %v2609_v59  ;;  %v3962_v61 = vpop.f32.mrb[11].mxu1  ;;  %v2692_v42 = vmax.f32 %v2682_v34, 0.0 }
 0x3bd   : > { %v2693_v44 = vmax.f32 %v2685_v54, 0.0 }
 0x3bf   : > { %v2696_v8 = vpack.c.bf16 %v2693_v44, %v2692_v42 }
 0x3c1   : > { %3967 = vmatprep.subr.bf16.mxu0 %v2696_v8 }
 0x3c2   : > { %3968 = vmatpush3.bf16.msra.mxu0 %v2696_v8  ;;  %v3567_v8 = vld [vmem:[%s5254_s2] ss:$0 sm:$0xff] }
 0x3c3   : > { %4053 = vmatprep.subr.bf16.mxu0 %v4339_v52  ;;  %vm3008_vm0 = vcmp.eq.s32.totalorder %v3567_v8, %v4471_v12  ;;  %v3162_v8 = vrot.slane (%p3143_p7), %v4498_v22, %v2772_v4 }
 0x3c4   : > { %v3568_v47 = vsel %vm3008_vm0, 1.0, %v4335_v9 }
 0x3c5   : > { %3970 = vmatmul.mubr.msk.bf16.vlgmr.msra.gmra.mrb[8].mxu0 %vm2700_vm15, %v591_v21  ;;  %v2479_v21 = vld [vmem:[%s4434_s30 + $0x48] sm:$0xff]  ;;  %v3011_v50 = vsel %vm2617_vm14, %v3568_v47, 0.0  ;;  %v3017_v20 = vpack.c.bf16 %v3568_v47, %v3568_v47 }
 0x3c6   : > { %3981 = vmatprep.mubr.msk.f32.mxu0 %vm4338_vm12, %v4335_v9  ;;  %4055 = vmatpush3.bf16.msra.mxu0 %v4054_v35  ;;  %v4060_v14 = vpack.c.bf16 %v2479_v21, %v2478_v19  ;;  %v2482_v35 = vld [vmem:[%s4434_s30 + $0x60] sm:$0xff]  ;;  %v2985_v19 = vsub.s32 5, %v4471_v12 }
 0x3c7   : > { %4056 = vmatprep.subr.bf16.mxu0 %v4339_v52  ;;  %3012 = vadd.xlane.f32.xlu0 %v3011_v50  ;;  %v4066_v40 = vpack.c.bf16 %v2483_v53, %v2482_v35 }
 0x3c8   : > { %4061 = vmatpush3.bf16.msra.mxu1 %v4060_v14  ;;  %v2992_v14 = vsub.s32 6, %v4471_v12 }
 0x3c9   : > { %4062 = vmatprep.subr.bf16.mxu1 %v4339_v52 }
 0x3ca   : > { %4058 = vmatpush3.bf16.msra.mxu0 %v4057_v27  ;;  %v2892_v27 = vsub.s32 4, %v4471_v12 }
 0x3cb   : > { %4007 = vmatprep.subr.bf16.mxu0 %v4335_v9 }
 0x3cc   : > { %4064 = vmatpush3.bf16.msra.mxu1 %v4063_v1  ;;  %v2893_v21 = vrot.slane %v5125_v29, %v2892_v27  ;;  %v2484_v1 = vld [vmem:[%s4434_s30 + $0x70] sm:$0xff] }
 0x3cd   : > { %4065 = vmatprep.subr.bf16.mxu1 %v4339_v52  ;;  %v4069_v51 = vpack.c.bf16 %v2485_v56, %v2484_v1 }
 0x498   : > { %v3971_v60 = vpop.f32.mrb[8].mxu0 }
 0x499   : > { %v2757_v39 = vadd.f32 %v3971_v60, %v2699_v57  ;;  %v2741_v28 = vpop.f32.mrb[9].mxu0  ;;  %v2986_v57 = vrot.slane %v5125_v29, %v2985_v19 }
 0x49a   : > { %v2755_v31 = vadd.f32 %v2741_v28, %v2697_v58  ;;  %v3972_v32 = vpop.f32.mrb[10].mxu0 }
 0x49b   : > { %2760 = vst.msk [vmem:[#allocation3 + $0x10] sm:$0xff] %vm521_vm1, %v2757_v39  ;;  %v2744_v33 = vpop.f32.mrb[11].mxu0  ;;  %v2993_v39 = vrot.slane %v5125_v29, %v2992_v14 }
 0x49c   : > { %2758 = vst.msk [vmem:[#allocation3] sm:$0xff] %vm521_vm1, %v2755_v31  ;;  %v2756_v36 = vadd.f32 %v2744_v33, %v2698_v30 }
 0x49e   : > { %2759 = vst.msk [vmem:[#allocation3 + $0x8] sm:$0xff] %vm521_vm1, %v2756_v36 }
 0x4a2   : > { %v2766_v18 = vld [vmem:[#allocation3 + $0x10] sm:$0xff] }
 0x4a3   : > { %v2764_v49 = vld [vmem:[#allocation3] sm:$0xff]  ;;  %v2779_v46 = vadd.f32 %v2776_v15, %v2766_v18 }
 0x4a4   : > { %v2777_v62 = vadd.f32 %v2774_v38, %v2764_v49 }
 0x4a5   : > { %v2765_v63 = vld [vmem:[#allocation3 + $0x8] sm:$0xff] }
 0x4a6   : > { %3982 = vmatmul.mubr.msk.f32.vlgmr.msra.gmra.mrb[6].mxu0 %vm521_vm1, %v2777_v62  ;;  %v2778_v0 = vadd.f32 %v2775_v43, %v2765_v63 }
 0x4a7   : > { %3984 = vmatprep.mubr.msk.f32.mxu0 %vm4338_vm12, %v4335_v9 }
 0x4aa   : > { %3985 = vmatmul.mubr.msk.f32.gmra.mrb[12].mxu0 %vm521_vm1, %v2778_v0 }
 0x4ab   : > { %3987 = vmatprep.mubr.msk.f32.mxu0 %vm4338_vm12, %v4335_v9 }
 0x4ae   : > { %3988 = vmatmul.mubr.msk.f32.gmra.mrb[14].mxu0 %vm521_vm1, %v2779_v46 }
 0x4af   : > { %4011 = vmatprep.mubr.msk.bf16.mxu0 %vm4338_vm12, %v4335_v9 }
 0x579   : > { %v2859_v6 = vpop.f32.mrb[6].mxu0 }
 0x57a   : > { %v2860_v55 = vadd.f32 %v2859_v6, %v2783_v3  ;;  %v3983_v10 = vpop.f32.mrb[7].mxu0 }
 0x57c   : > { %v2877_v11 = vmul.f32 %v2876_v5, %v2860_v55 }
 0x57d   : > { %v2864_v13 = vpop.f32.mrb[12].mxu0 }
 0x57e   : > { %v2884_v16 = vadd.f32 %v2883_v7, %v2877_v11  ;;  %v2865_v17 = vadd.f32 %v2864_v13, %v2783_v3  ;;  %v3986_v24 = vpop.f32.mrb[13].mxu0  ;;  %v3067_v11 = vld [vmem:[#allocation5] sm:$0xff] }
 0x57f   : > { %v3165_v24 = vld [vmem:[%s5262_s10] sm:$0xff] (%p3143_p7) }
 0x580   : > { %v2887_v25 = vmax.f32 %v2884_v16, 0.0  ;;  %v2878_v59 = vmul.f32 %v2876_v5, %v2865_v17 }
 0x581   : > { %v2869_v26 = vpop.f32.mrb[14].mxu0 }
 0x582   : > { %v2870_v34 = vadd.f32 %v2869_v26, %v2783_v3  ;;  %v3989_v2 = vpop.f32.mrb[15].mxu0  ;;  %3999 = vmatmul.mubr.msk.f32.vlgmr.msra.gmra.mrb[12].mxu1 %vm521_vm1, %v2887_v25  ;;  %v2885_v41 = vadd.f32 %v2883_v7, %v2878_v59  ;;  %v3013_v3 = vpop.xlane.xlu0 %3012  ;;  %v3166_v25 = vld [vmem:[%s5262_s10 + $0x8] sm:$0xff] (%p3143_p7)  ;;  %v3167_v59 = vld [vmem:[%s5262_s10 + $0x10] sm:$0xff] (%p3143_p7)  ;;  %v3152_v26 = vrot.slane (%p3143_p7), %v4498_v22, %v2985_v19 }
 0x583   : > { %4001 = vmatprep.mubr.msk.f32.mxu1 %vm4338_vm12, %v4335_v9  ;;  %4067 = vmatpush3.bf16.msra.mxu1 %v4066_v40  ;;  %v3014_v45 = vmax.f32 %v3013_v3, 1.0  ;;  %v4072_v2 = vpack.c.bf16 (%p3143_p7), %v3166_v25, %v3165_v24  ;;  %v3572_v40 = vld [vmem:[%s5263_s11] ss:$0 sm:$0xff] (%p3143_p7) }
 0x584   : > { %v2879_v54 = vmul.f32 %v2876_v5, %v2870_v34  ;;  %v2888_v61 = vmax.f32 %v2885_v41, 0.0  ;;  %4068 = vmatprep.subr.bf16.mxu1 %v4339_v52  ;;  %v4340_v34 = vmov (%p3143_p7), 0.0|0.0   ;;  %v3168_v41 = vld [vmem:[%s5262_s10 + $0x18] sm:$0xff] (%p3143_p7) }
 0x585   : > { %4303 = vrcp.f32 %v3014_v45  ;;  %v4075_v47 = vpack.c.bf16 (%p3143_p7), %v3168_v41, %v3167_v59 }
 0x586   : > { %4002 = vmatmul.mubr.msk.f32.gmra.mrb[14].mxu1 %vm521_vm1, %v2888_v61  ;;  %v2886_v42 = vadd.f32 %v2883_v7, %v2879_v54  ;;  %v4342_v54 = vmov (%p3143_p7), 0.0  }
 0x587   : > { %4004 = vmatprep.mubr.msk.f32.mxu1 %vm4338_vm12, %v4335_v9  ;;  %4070 = vmatpush3.bf16.msra.mxu1 %v4069_v51 }
 0x588   : > { %v2889_v44 = vmax.f32 %v2886_v42, 0.0  ;;  %v3157_v42 = vrot.slane (%p3143_p7), %v4498_v22, %v2992_v14 }
 0x58a   : > { %4005 = vmatmul.mubr.msk.f32.gmra.mrb[16].mxu1 %vm521_vm1, %v2889_v44 }
 0x58b   : > { %4023 = vmatprep.mubr.msk.f32.mxu1 %vm4338_vm12, %v4335_v9 }
 0x58f   : > { %v4304_v5 = vpop.eup %4303 }
 0x655   : > { %v2969_v58 = vpop.f32.mrb[12].mxu1 }
 0x656   : > { %v2970_v60 = vadd.f32 %v2969_v58, %v2893_v21  ;;  %v4000_v28 = vpop.f32.mrb[13].mxu1 }
 0x658   : > { %v2987_v30 = vmul.f32 %v2986_v57, %v2970_v60 }
 0x659   : > { %v2974_v31 = vpop.f32.mrb[14].mxu1 }
 0x65a   : > { %v2994_v52 = vadd.f32 %v2993_v39, %v2987_v30  ;;  %v2975_v32 = vadd.f32 %v2974_v31, %v2893_v21  ;;  %v4003_v33 = vpop.f32.mrb[15].mxu1 }
 0x65c   : > { %v2997_v36 = vmax.f32 %v2994_v52, 0.0  ;;  %v2988_v37 = vmul.f32 %v2986_v57, %v2975_v32 }
 0x65d   : > { %v2979_v38 = vpop.f32.mrb[16].mxu1 }
 0x65e   : > { %3000 = vst.msk [vmem:[#allocation2] sm:$0xff] %vm521_vm1, %v2997_v36  ;;  %v2995_v49 = vadd.f32 %v2993_v39, %v2988_v37  ;;  %v2980_v62 = vadd.f32 %v2979_v38, %v2893_v21  ;;  %v4006_v43 = vpop.f32.mrb[17].mxu1 }
 0x660   : > { %v2998_v63 = vmax.f32 %v2995_v49, 0.0  ;;  %v2989_v0 = vmul.f32 %v2986_v57, %v2980_v62 }
 0x662   : > { %3001 = vst.msk [vmem:[#allocation2 + $0x8] sm:$0xff] %vm521_vm1, %v2998_v63  ;;  %v3018_v29 = vpack.c.bf16 %v2998_v63, %v2997_v36  ;;  %v2996_v15 = vadd.f32 %v2993_v39, %v2989_v0 }
 0x664   : > { %v2999_v18 = vmax.f32 %v2996_v15, 0.0  ;;  %4008 = vmatpush3.bf16.msra.mxu0 %v3018_v29 }
 0x665   : > { %4009 = vmatprep.subr.bf16.mxu0 %v4335_v9 }
 0x666   : > { %3002 = vst.msk [vmem:[#allocation2 + $0x10] sm:$0xff] %vm521_vm1, %v2999_v18  ;;  %v3019_v46 = vpack.c.bf16 %v2999_v18, %v2999_v18 }
 0x668   : > { %v3024_v48 = vsel %vm2627_vm13, %v3019_v46, 0 }
 0x669   : > { %4010 = vmatpush3.bf16.msra.mxu0 %v3024_v48 }
 0x66a   : > { %4071 = vmatprep.subr.bf16.mxu0 (%p3143_p7), %v4340_v34 }
 0x66c   : > { %4012 = vmatmul.mubr.msk.bf16.vlgmr.msra.gmra.mrb[16].mxu0 %vm2617_vm14, %v3017_v20 }
 0x66d   : > { %4034 = vmatprep.mubr.msk.f32.mxu0 (%p3143_p7), %vm4341_vm2, %v4342_v54  ;;  %4073 = vmatpush3.bf16.msra.mxu0 (%p3143_p7), %v4072_v2 }
 0x66e   : > { %4074 = vmatprep.subr.bf16.mxu0 (%p3143_p7), %v4340_v34 }
 0x671   : > { %4076 = vmatpush3.bf16.msra.mxu0 (%p3143_p7), %v4075_v47 }
 0x73f   : > { %v3060_v6 = vpop.f32.mrb[16].mxu0 }
 0x740   : > { %v3066_v9 = vmul.f32 %v4304_v5, %v3060_v6  ;;  %v4013_v55 = vpop.f32.mrb[17].mxu0 }
 0x741   : > { %v3063_v7 = vpop.f32.mrb[18].mxu0 }
 0x742   : > { %v4014_v10 = vpop.f32.mrb[19].mxu0  ;;  %4024 = vmatmul.mubr.msk.f32.vlgmr.msra.gmra.mrb[18].mxu1 %vm521_vm1, %v3066_v9 }
 0x812   : > { %3147 = sbr.rel (!%p3143_p7) target bundleno = 2622 (0xa3e), region = 88 }
 0x815   : > { %v3137_v13 = vpop.f32.mrb[18].mxu1 }
 0x816   : > { %v3141_v16 = vadd.f32 %v3137_v13, %v3067_v11  ;;  %v4025_v17 = vpop.f32.mrb[19].mxu1 }
 0x818   : > { %3142 = vst.msk [vmem:[#allocation5] sm:$0xff] %vm521_vm1, %v3141_v16 }
 0x81f   : > { %v3148_v61 = vld [vmem:[#allocation5] sm:$0xff] }
 0x820   : > { %v3153_v44 = vadd.f32 %v3152_v26, %v3148_v61 }
 0x822   : > { %v3158_v50 = vmul.f32 %v3157_v42, %v3153_v44 }
 0x824   : > { %v3163_v35 = vadd.f32 %v3162_v8, %v3158_v50 }
 0x826   : > { %v3164_v53 = vmax.f32 %v3163_v35, 0.0 }
 0x828   : > { %4035 = vmatmul.mubr.msk.f32.vlgmr.msra.gmra.mrb[0].mxu0 %vm521_vm1, %v3164_v53 }
 0x8fb   : > { %v3245_v27 = vpop.f32.mrb[0].mxu0 }
 0x8fc   : > { %v3246_v19 = vadd.f32 %v3572_v40, %v3245_v27  ;;  %v4036_v12 = vpop.f32.mrb[1].mxu0 }
 0x8fe   : > { %v3250_v22 = vsel %vm3249_vm3, %v3246_v19, -inf }
 0x8ff   : > { %3251 = vmax.xlane.f32.xlu0 %v3250_v22 }
 0x98c   : > { %v3252_v4 = vpop.xlane.xlu0 %3251 }
 0x98d   : > { %v3253_v21 = vsub.f32 %v3246_v19, %v3252_v4 }
 0x98f   : > { %v3254_v14 = vmul.f32 1.442695, %v3253_v21 }
 0x991   : > { %4305 = vpow2.f32 %v3254_v14 }
 0x99b   : > { %v4306_v57 = vpop.eup %4305 }
 0x99c   : > { %v3256_v58 = vsel %vm3249_vm3, %v4306_v57, 0.0 }
 0x99d   : > { %3257 = vadd.xlane.f32.xlu0 %v3256_v58 }
 0xa2a   : > { %v3258_v60 = vpop.xlane.xlu0 %3257 }
 0xa2b   : > { %4307 = vlog2.f32 %v3258_v60 }
 0xa35   : > { %v4308_v39 = vpop.eup %4307 }
 0xa36   : > { %v3260_v28 = vmul.f32 0.6931472, %v4308_v39 }
 0xa38   : > { %v3261_v30 = vadd.f32 %v3260_v28, %v3252_v4 }
 0xa3a   : > { %v3262_v31 = vsub.f32 %v3246_v19, %v3261_v30 }
 0xa3c   : > { %v3263_v52 = vsel %vm3249_vm3, %v3262_v31, 0.0 }
 0xa3d   : > { %3264 = vst [vmem:[%s5264_s12] sm:$0xff] %v3263_v52 }
 0xa3e PF: > { %s22_s23 = sadd.s32 1, %s4331_s23   ;;  %s5265_s21 = smov %s4327_s22 }
 0xa3f   : > { %p19_p8 = scmp.ge.s32.totalorder %s22_s23, 5   ;;  %s5266_s22 = smov %s5268_s24 }
 0xa41   :  { %21 = sbr.rel (!%p19_p8) target bundleno = 2 (0x2), region = 128 }

</bundles_post_ra>
